<compile_context>
chip_gen: v7x
topology: tpu7x:2x2x1
jax: 0.10.0
libtpu: 0.0.40
codegen_flags: <defaults>
</compile_context>

<pallas_src>
import numpy as np
import jax
import jax.numpy as jnp
from jax.experimental import pallas as pl
from jax.experimental.pallas import tpu as pltpu

BN_EPS = 1e-5
INV_STD = float(1.0 / np.sqrt(1.0 + BN_EPS))  # eval-mode BN with default buffers


def _round_up(x, m):
    return (x + m - 1) // m * m


# --------------------------- fused ADBlock kernel -------------------------- #

def _make_adblock_kernel(offs_d, offs_g, M, Lwin, MP, CP, has_convres):
    """Whole-ADBlock kernel for one batch element (grid axis = batch)."""
    nd = len(offs_d)
    ng = len(offs_g)

    def kernel(*refs):
        if has_convres:
            (x_ref, mask_ref, w1_ref, w2_ref, wd_ref, wg_ref, wr_ref,
             out_ref, h2_scr, xs_scr, rhs_scr) = refs
        else:
            (x_ref, mask_ref, w1_ref, w2_ref, wd_ref, wg_ref,
             out_ref, h2_scr, xs_scr, rhs_scr) = refs
            wr_ref = None

        f32 = jnp.float32
        bf16 = jnp.bfloat16

        # conv_1 / conv_2: 1x1 convs (norm -> relu -> conv) over the full slab;
        # zero padding is preserved automatically (norm(0)=relu(0)=0, 1x1 conv).
        y0 = jnp.maximum(x_ref[0] * INV_STD, 0.0)                   # (Cin, Ltot)
        h1 = jnp.dot(w1_ref[...], y0, preferred_element_type=f32)   # (C4,  Ltot)
        y1 = jnp.maximum(h1 * INV_STD, 0.0)
        h2 = jnp.dot(w2_ref[...], y1, preferred_element_type=f32)   # (MP,  Ltot)
        # post norm/relu activation of conv_2, staged in VMEM for tap reads
        h2_scr[...] = jnp.maximum(h2 * INV_STD, 0.0).astype(bf16)

        # dilated branches (scalars folded into wd) + inner 1x1 res:
        # stacked im2col RHS -> one big-K bf16 MXU matmul.
        for t, off in enumerate(offs_d):
            rhs_scr[pl.ds(t * MP, MP), :] = h2_scr[:, pl.ds(M + off, Lwin)]
        xs = jnp.dot(wd_ref[...], rhs_scr[pl.ds(0, nd * MP), :],
                     preferred_element_type=f32)                    # (CP, Lwin)

        # gconv_3 input: norm -> relu, then re-zero the frame padding so its
        # taps read true zeros (fusion safety: no garbage-column leakage).
        xs_act = jnp.maximum(xs * INV_STD, 0.0) * mask_ref[...]
        xs_scr[...] = jnp.zeros_like(xs_scr)
        xs_scr[:, pl.ds(M, Lwin)] = xs_act.astype(bf16)

        # gconv_3 (1x3): same stacked-RHS scheme, K = 3*CP.
        for t, off in enumerate(offs_g):
            rhs_scr[pl.ds(t * CP, CP), :] = xs_scr[:, pl.ds(M + off, Lwin)]
        g = jnp.dot(wg_ref[...], rhs_scr[pl.ds(0, ng * CP), :],
                    preferred_element_type=f32)                     # (Cout, Lwin)

        # outer residual: conv_res(x) if in_ch != out_ch, else identity.
        if has_convres:
            res = jnp.dot(wr_ref[...], y0[:, M:M + Lwin],
                          preferred_element_type=f32)               # (Cout, Lwin)
        else:
            res = x_ref[0][:, M:M + Lwin]

        out_ref[0] = (g + res).astype(out_ref.dtype)

    return kernel


# ------------------------- parameter init / packing ------------------------ #

def init_adblock_params(key, in_ch, out_ch, dilated=(1, 3, 5)):
    mid = in_ch if in_ch <= out_ch else out_ch
    c4 = in_ch // 4
    ks = jax.random.split(key, 8)

    def conv_w(k, cout, cin, kh, kw):
        fan_in = cin * kh * kw
        return (jax.random.normal(k, (cout, cin, kh, kw), jnp.float32)
                * np.sqrt(2.0 / fan_in))

    return dict(
        w1=jnp.ones((1,), jnp.float32),
        w2=jnp.ones((1,), jnp.float32),
        w3=jnp.ones((1,), jnp.float32),
        w_conv1=conv_w(ks[0], c4, in_ch, 1, 1),
        w_conv2=conv_w(ks[1], mid, c4, 1, 1),
        w_d0=conv_w(ks[2], out_ch, mid, 3, 3),
        w_d1=conv_w(ks[3], out_ch, mid, 3, 3),
        w_d2=conv_w(ks[4], out_ch, mid, 3, 3),
        w_res=conv_w(ks[5], out_ch, mid, 1, 1),
        w_g=conv_w(ks[6], out_ch, out_ch, 1, 3),
        w_convres=(conv_w(ks[7], out_ch, in_ch, 1, 1) if in_ch != out_ch else None),
        dilated=tuple(dilated),
    )


def pack_adblock_params(p):
    """Hoisted per-parameter repacking: OIHW -> stacked-K blocks, scalars folded,
    channel dims padded to multiples of 16 (bf16 tile alignment)."""
    c4, in_ch = p['w_conv1'].shape[:2]
    mid = p['w_conv2'].shape[0]
    out_ch = p['w_d0'].shape[0]
    CP = _round_up(out_ch, 16)
    MP = _round_up(mid, 16)

    W1p = p['w_conv1'][:, :, 0, 0].astype(jnp.float32)                    # (c4, Cin)
    W2p = jnp.pad(p['w_conv2'][:, :, 0, 0],
                  ((0, MP - mid), (0, 0))).astype(jnp.float32)            # (MP, c4)

    # dilated branches (scaled by w1/w2/w3) + inner 1x1 res, tap-major K blocks
    blocks = []
    for scal_name, w_name in (('w1', 'w_d0'), ('w2', 'w_d1'), ('w3', 'w_d2')):
        wb = p[w_name] * p[scal_name][0]                                  # (Cout, mid, 3, 3)
        for kh in range(3):
            for kw in range(3):
                blocks.append(jnp.pad(wb[:, :, kh, kw],
                                      ((0, CP - out_ch), (0, MP - mid))))
    blocks.append(jnp.pad(p['w_res'][:, :, 0, 0],
                          ((0, CP - out_ch), (0, MP - mid))))
    Wdp = jnp.concatenate(blocks, axis=1).astype(jnp.bfloat16)            # (CP, 28*MP)

    gblocks = [jnp.pad(p['w_g'][:, :, 0, kw], ((0, 0), (0, CP - out_ch)))
               for kw in range(3)]
    Wgp = jnp.concatenate(gblocks, axis=1).astype(jnp.bfloat16)           # (Cout, 3*CP)

    Wrp = None
    if p['w_convres'] is not None:
        Wrp = p['w_convres'][:, :, 0, 0].astype(jnp.float32)              # (Cout, Cin)

    return dict(W1p=W1p, W2p=W2p, Wdp=Wdp, Wgp=Wgp, Wrp=Wrp,
                in_ch=in_ch, out_ch=out_ch, mid=mid, c4=c4, CP=CP, MP=MP,
                dilated=p['dilated'])


# --------------------------------- forward --------------------------------- #

def adblock_forward_pallas(x, packed):
    N, Cin, H, W = x.shape
    assert Cin == packed['in_ch']
    Cout = packed['out_ch']
    CP, MP = packed['CP'], packed['MP']
    dil = packed['dilated']

    # global frame padding = max padding over every branch in the block
    p_h = max(dil)                    # dilated 3x3: pad = d ; gconv row pad = 0
    p_w = max(max(dil), 1)            # gconv (1,3): col pad = 1
    Hp, Wp = H + 2 * p_h, W + 2 * p_w
    Lp = Hp * Wp

    # static tap offsets in the flattened global frame
    offs_d = []
    for d in dil:
        for kh in range(3):
            for kw in range(3):
                offs_d.append((kh - 1) * d * Wp + (kw - 1) * d)
    offs_d.append(0)                  # inner 1x1 res branch
    offs_g = [-1, 0, 1]               # gconv (1,3), padding (0,1)

    off_min = min(offs_d + offs_g)
    off_max = max(offs_d + offs_g)
    Lwin = _round_up(Lp, 128)                          # lane-dense output window
    M = _round_up(max(0, -off_min), 128)               # 128-aligned frame offset
    Ltot = _round_up(M + Lwin + max(0, off_max), 128)  # slab length incl. slack

    # input slab: zero-padded frame placed at lane offset M, zeros elsewhere
    xp = jnp.pad(x, ((0, 0), (0, 0), (p_h, p_h), (p_w, p_w))).reshape(N, Cin, Lp)
    x_slab = jnp.pad(xp, ((0, 0), (0, 0), (M, Ltot - M - Lp)))

    # validity mask over the output window (1 at true feature positions)
    jj = np.arange(Lwin)
    rr, cc = jj // Wp, jj % Wp
    valid = (rr >= p_h) & (rr < p_h + H) & (cc >= p_w) & (cc < p_w + W)
    mask = jnp.asarray(valid.astype(np.float32)).reshape(1, Lwin)

    has_convres = packed['Wrp'] is not None
    inputs = [x_slab, mask, packed['W1p'], packed['W2p'], packed['Wdp'],
              packed['Wgp']]
    in_specs = [
        pl.BlockSpec((1, Cin, Ltot), lambda n: (n, 0, 0)),
        pl.BlockSpec((1, Lwin), lambda n: (0, 0)),
        pl.BlockSpec(packed['W1p'].shape, lambda n: (0, 0)),
        pl.BlockSpec(packed['W2p'].shape, lambda n: (0, 0)),
        pl.BlockSpec(packed['Wdp'].shape, lambda n: (0, 0)),
        pl.BlockSpec(packed['Wgp'].shape, lambda n: (0, 0)),
    ]
    if has_convres:
        inputs.append(packed['Wrp'])
        in_specs.append(pl.BlockSpec(packed['Wrp'].shape, lambda n: (0, 0)))

    rhs_rows = max(len(offs_d) * MP, len(offs_g) * CP)
    kernel = _make_adblock_kernel(tuple(offs_d), tuple(offs_g), M, Lwin, MP, CP,
                                  has_convres)

    out_flat = pl.pallas_call(
        kernel,
        grid=(N,),
        in_specs=in_specs,
        out_specs=pl.BlockSpec((1, Cout, Lwin), lambda n: (n, 0, 0)),
        out_shape=jax.ShapeDtypeStruct((N, Cout, Lwin), jnp.float32),
        scratch_shapes=[
            pltpu.VMEM((MP, Ltot), jnp.bfloat16),       # relu(norm(conv_2 out))
            pltpu.VMEM((CP, Ltot), jnp.bfloat16),       # masked gconv input
            pltpu.VMEM((rhs_rows, Lwin), jnp.bfloat16), # stacked im2col RHS
        ],
        compiler_params=pltpu.CompilerParams(
            dimension_semantics=("parallel",)),
    )(*inputs)

    out = out_flat[:, :, :Lp].reshape(N, Cout, Hp, Wp)
    return out[:, :, p_h:p_h + H, p_w:p_w + W]


# -------------------------- pure-JAX reference ----------------------------- #

def adblock_forward_ref(x, p):
    d = p['dilated']

    def nrc(x, w, dil=(1, 1)):
        y = jnp.maximum(x * INV_STD, 0.0)
        KH, KW = w.shape[2], w.shape[3]
        ph, pw = (KH - 1) // 2 * dil[0], (KW - 1) // 2 * dil[1]
        return jax.lax.conv_general_dilated(
            y, w, (1, 1), ((ph, ph), (pw, pw)), rhs_dilation=dil,
            dimension_numbers=('NCHW', 'OIHW', 'NCHW'),
            precision=jax.lax.Precision.HIGHEST)

    res = x
    h = nrc(x, p['w_conv1'])
    h = nrc(h, p['w_conv2'])
    xd = (p['w1'] * nrc(h, p['w_d0'], (d[0], d[0]))
          + p['w2'] * nrc(h, p['w_d1'], (d[1], d[1]))
          + p['w3'] * nrc(h, p['w_d2'], (d[2], d[2])))
    xs = xd + nrc(h, p['w_res'])
    g = nrc(xs, p['w_g'])
    if p['w_convres'] is not None:
        res = nrc(res, p['w_convres'])
    return g + res


if __name__ == "__main__":
    key = jax.random.PRNGKey(0)
    k_x, k_p = jax.random.split(key)
    N, Cin, H, W = 2, 8, 16, 16
    Cout = 16

    x = jax.random.normal(k_x, (N, Cin, H, W), jnp.float32)
    params = init_adblock_params(k_p, Cin, Cout)
    packed = pack_adblock_params(params)   # hoisted: static across forwards

    out = adblock_forward_pallas(x, packed)
    out = jax.block_until_ready(out)
    assert out.shape == (N, Cout, H, W), out.shape

    ref = adblock_forward_ref(x, params)
    # bf16 MXU contractions (f32 accumulate) vs. an all-f32 reference: check the
    # max absolute error normalized by the output scale.
    err = float(jnp.max(jnp.abs(out - ref)) / (jnp.max(jnp.abs(ref)) + 1e-8))
    assert err < 2e-2, f"normalized max-abs error too large: {err}"
    print("KERNEL_OK")
</pallas_src>

<mosaic_0001>
module attributes {stable_mosaic.version = 11 : i64} {
  func.func @kernel(%arg0: i32, %arg1: memref<1x8x1280xf32, #tpu.memory_space<vmem>>, %arg2: memref<1x768xf32, #tpu.memory_space<vmem>>, %arg3: memref<2x8xf32, #tpu.memory_space<vmem>>, %arg4: memref<16x2xf32, #tpu.memory_space<vmem>>, %arg5: memref<16x448xbf16, #tpu.memory_space<vmem>>, %arg6: memref<16x48xbf16, #tpu.memory_space<vmem>>, %arg7: memref<16x8xf32, #tpu.memory_space<vmem>>, %arg8: memref<1x16x768xf32, #tpu.memory_space<vmem>>, %arg9: memref<16x1280xbf16, #tpu.memory_space<vmem>>, %arg10: memref<16x1280xbf16, #tpu.memory_space<vmem>>, %arg11: memref<448x768xbf16, #tpu.memory_space<vmem>>) attributes {dimension_semantics = [#tpu.dimension_semantics<parallel>], iteration_bounds = array<i64: 2>, scalar_prefetch = 0 : i64, scratch_operands = 3 : i64, tpu.core_type = #tpu.core_type<tc>, window_params = [{transform_indices = @transform_0, window_bounds = array<i64: 1, 8, 1280>}, {pipeline_mode = #tpu.pipeline_mode<synchronous>, transform_indices = @transform_1, window_bounds = array<i64: 1, 768>}, {pipeline_mode = #tpu.pipeline_mode<synchronous>, transform_indices = @transform_2, window_bounds = array<i64: 2, 8>}, {pipeline_mode = #tpu.pipeline_mode<synchronous>, transform_indices = @transform_3, window_bounds = array<i64: 16, 2>}, {pipeline_mode = #tpu.pipeline_mode<synchronous>, transform_indices = @transform_4, window_bounds = array<i64: 16, 448>}, {pipeline_mode = #tpu.pipeline_mode<synchronous>, transform_indices = @transform_5, window_bounds = array<i64: 16, 48>}, {pipeline_mode = #tpu.pipeline_mode<synchronous>, transform_indices = @transform_6, window_bounds = array<i64: 16, 8>}, {transform_indices = @transform_7, window_bounds = array<i64: 1, 16, 768>}]} {
    %c0 = arith.constant 0 : index
    %c0_0 = arith.constant 0 : index
    %c0_1 = arith.constant 0 : index
    %0 = vector.load %arg1[%c0, %c0_0, %c0_1] : memref<1x8x1280xf32, #tpu.memory_space<vmem>>, vector<1x8x1280xf32>
    %1 = vector.shape_cast %0 : vector<1x8x1280xf32> to vector<8x1280xf32>
    %cst = arith.constant 0.999994993 : f32
    %2 = vector.broadcast %cst : f32 to vector<8x1280xf32>
    %3 = arith.mulf %1, %2 : vector<8x1280xf32>
    %cst_2 = arith.constant 0.000000e+00 : f32
    %4 = vector.broadcast %cst_2 : f32 to vector<8x1280xf32>
    %5 = arith.maximumf %3, %4 : vector<8x1280xf32>
    %c0_3 = arith.constant 0 : index
    %c0_4 = arith.constant 0 : index
    %6 = vector.load %arg3[%c0_3, %c0_4] : memref<2x8xf32, #tpu.memory_space<vmem>>, vector<2x8xf32>
    %cst_5 = arith.constant dense<0.000000e+00> : vector<2x1280xf32>
    %7 = tpu.matmul %6, %5, %cst_5 {dimension_numbers = #tpu.dot_dimension_numbers<[1], [0], [0], [1], [0, 0, 1, 1], [], []>} : vector<2x8xf32>, vector<8x1280xf32>, vector<2x1280xf32> -> vector<2x1280xf32>
    %cst_6 = arith.constant 0.999994993 : f32
    %8 = vector.broadcast %cst_6 : f32 to vector<2x1280xf32>
    %9 = arith.mulf %7, %8 : vector<2x1280xf32>
    %cst_7 = arith.constant 0.000000e+00 : f32
    %10 = vector.broadcast %cst_7 : f32 to vector<2x1280xf32>
    %11 = arith.maximumf %9, %10 : vector<2x1280xf32>
    %c0_8 = arith.constant 0 : index
    %c0_9 = arith.constant 0 : index
    %12 = vector.load %arg4[%c0_8, %c0_9] : memref<16x2xf32, #tpu.memory_space<vmem>>, vector<16x2xf32>
    %cst_10 = arith.constant dense<0.000000e+00> : vector<16x1280xf32>
    %13 = tpu.matmul %12, %11, %cst_10 {dimension_numbers = #tpu.dot_dimension_numbers<[1], [0], [0], [1], [0, 0, 1, 1], [], []>} : vector<16x2xf32>, vector<2x1280xf32>, vector<16x1280xf32> -> vector<16x1280xf32>
    %cst_11 = arith.constant 0.999994993 : f32
    %14 = vector.broadcast %cst_11 : f32 to vector<16x1280xf32>
    %15 = arith.mulf %13, %14 : vector<16x1280xf32>
    %cst_12 = arith.constant 0.000000e+00 : f32
    %16 = vector.broadcast %cst_12 : f32 to vector<16x1280xf32>
    %17 = arith.maximumf %15, %16 : vector<16x1280xf32>
    %18 = arith.truncf %17 : vector<16x1280xf32> to vector<16x1280xbf16>
    %c0_13 = arith.constant 0 : index
    %c0_14 = arith.constant 0 : index
    %19 = vector.load %arg9[%c0_13, %c0_14] : memref<16x1280xbf16, #tpu.memory_space<vmem>>, vector<16x1280xbf16>
    tpu.vector_store %arg9[%c0_13, %c0_14], %18 {strides = array<i32>} : memref<16x1280xbf16, #tpu.memory_space<vmem>>, vector<16x1280xbf16>,
    %c0_15 = arith.constant 0 : index
    %c229 = arith.constant 229 : index
    %20 = vector.load %arg9[%c0_15, %c229] : memref<16x1280xbf16, #tpu.memory_space<vmem>>, vector<16x768xbf16>
    %c0_16 = arith.constant 0 : index
    %c0_17 = arith.constant 0 : index
    %21 = vector.load %arg11[%c0_16, %c0_17] : memref<448x768xbf16, #tpu.memory_space<vmem>>, vector<16x768xbf16>
    tpu.vector_store %arg11[%c0_16, %c0_17], %20 {strides = array<i32>} : memref<448x768xbf16, #tpu.memory_space<vmem>>, vector<16x768xbf16>,
    %c0_18 = arith.constant 0 : index
    %c230 = arith.constant 230 : index
    %22 = vector.load %arg9[%c0_18, %c230] : memref<16x1280xbf16, #tpu.memory_space<vmem>>, vector<16x768xbf16>
    %c16 = arith.constant 16 : index
    %c0_19 = arith.constant 0 : index
    %23 = vector.load %arg11[%c16, %c0_19] : memref<448x768xbf16, #tpu.memory_space<vmem>>, vector<16x768xbf16>
    tpu.vector_store %arg11[%c16, %c0_19], %22 {strides = array<i32>} : memref<448x768xbf16, #tpu.memory_space<vmem>>, vector<16x768xbf16>,
    %c0_20 = arith.constant 0 : index
    %c231 = arith.constant 231 : index
    %24 = vector.load %arg9[%c0_20, %c231] : memref<16x1280xbf16, #tpu.memory_space<vmem>>, vector<16x768xbf16>
    %c32 = arith.constant 32 : index
    %c0_21 = arith.constant 0 : index
    %25 = vector.load %arg11[%c32, %c0_21] : memref<448x768xbf16, #tpu.memory_space<vmem>>, vector<16x768xbf16>
    tpu.vector_store %arg11[%c32, %c0_21], %24 {strides = array<i32>} : memref<448x768xbf16, #tpu.memory_space<vmem>>, vector<16x768xbf16>,
    %c0_22 = arith.constant 0 : index
    %c255 = arith.constant 255 : index
    %26 = vector.load %arg9[%c0_22, %c255] : memref<16x1280xbf16, #tpu.memory_space<vmem>>, vector<16x768xbf16>
    %c48 = arith.constant 48 : index
    %c0_23 = arith.constant 0 : index
    %27 = vector.load %arg11[%c48, %c0_23] : memref<448x768xbf16, #tpu.memory_space<vmem>>, vector<16x768xbf16>
    tpu.vector_store %arg11[%c48, %c0_23], %26 {strides = array<i32>} : memref<448x768xbf16, #tpu.memory_space<vmem>>, vector<16x768xbf16>,
    %c0_24 = arith.constant 0 : index
    %c256 = arith.constant 256 : index
    %28 = vector.load %arg9[%c0_24, %c256] : memref<16x1280xbf16, #tpu.memory_space<vmem>>, vector<16x768xbf16>
    %c64 = arith.constant 64 : index
    %c0_25 = arith.constant 0 : index
    %29 = vector.load %arg11[%c64, %c0_25] : memref<448x768xbf16, #tpu.memory_space<vmem>>, vector<16x768xbf16>
    tpu.vector_store %arg11[%c64, %c0_25], %28 {strides = array<i32>} : memref<448x768xbf16, #tpu.memory_space<vmem>>, vector<16x768xbf16>,
    %c0_26 = arith.constant 0 : index
    %c257 = arith.constant 257 : index
    %30 = vector.load %arg9[%c0_26, %c257] : memref<16x1280xbf16, #tpu.memory_space<vmem>>, vector<16x768xbf16>
    %c80 = arith.constant 80 : index
    %c0_27 = arith.constant 0 : index
    %31 = vector.load %arg11[%c80, %c0_27] : memref<448x768xbf16, #tpu.memory_space<vmem>>, vector<16x768xbf16>
    tpu.vector_store %arg11[%c80, %c0_27], %30 {strides = array<i32>} : memref<448x768xbf16, #tpu.memory_space<vmem>>, vector<16x768xbf16>,
    %c0_28 = arith.constant 0 : index
    %c281 = arith.constant 281 : index
    %32 = vector.load %arg9[%c0_28, %c281] : memref<16x1280xbf16, #tpu.memory_space<vmem>>, vector<16x768xbf16>
    %c96 = arith.constant 96 : index
    %c0_29 = arith.constant 0 : index
    %33 = vector.load %arg11[%c96, %c0_29] : memref<448x768xbf16, #tpu.memory_space<vmem>>, vector<16x768xbf16>
    tpu.vector_store %arg11[%c96, %c0_29], %32 {strides = array<i32>} : memref<448x768xbf16, #tpu.memory_space<vmem>>, vector<16x768xbf16>,
    %c0_30 = arith.constant 0 : index
    %c282 = arith.constant 282 : index
    %34 = vector.load %arg9[%c0_30, %c282] : memref<16x1280xbf16, #tpu.memory_space<vmem>>, vector<16x768xbf16>
    %c112 = arith.constant 112 : index
    %c0_31 = arith.constant 0 : index
    %35 = vector.load %arg11[%c112, %c0_31] : memref<448x768xbf16, #tpu.memory_space<vmem>>, vector<16x768xbf16>
    tpu.vector_store %arg11[%c112, %c0_31], %34 {strides = array<i32>} : memref<448x768xbf16, #tpu.memory_space<vmem>>, vector<16x768xbf16>,
    %c0_32 = arith.constant 0 : index
    %c283 = arith.constant 283 : index
    %36 = vector.load %arg9[%c0_32, %c283] : memref<16x1280xbf16, #tpu.memory_space<vmem>>, vector<16x768xbf16>
    %c128 = arith.constant 128 : index
    %c0_33 = arith.constant 0 : index
    %37 = vector.load %arg11[%c128, %c0_33] : memref<448x768xbf16, #tpu.memory_space<vmem>>, vector<16x768xbf16>
    tpu.vector_store %arg11[%c128, %c0_33], %36 {strides = array<i32>} : memref<448x768xbf16, #tpu.memory_space<vmem>>, vector<16x768xbf16>,
    %c0_34 = arith.constant 0 : index
    %c175 = arith.constant 175 : index
    %38 = vector.load %arg9[%c0_34, %c175] : memref<16x1280xbf16, #tpu.memory_space<vmem>>, vector<16x768xbf16>
    %c144 = arith.constant 144 : index
    %c0_35 = arith.constant 0 : index
    %39 = vector.load %arg11[%c144, %c0_35] : memref<448x768xbf16, #tpu.memory_space<vmem>>, vector<16x768xbf16>
    tpu.vector_store %arg11[%c144, %c0_35], %38 {strides = array<i32>} : memref<448x768xbf16, #tpu.memory_space<vmem>>, vector<16x768xbf16>,
    %c0_36 = arith.constant 0 : index
    %c178 = arith.constant 178 : index
    %40 = vector.load %arg9[%c0_36, %c178] : memref<16x1280xbf16, #tpu.memory_space<vmem>>, vector<16x768xbf16>
    %c160 = arith.constant 160 : index
    %c0_37 = arith.constant 0 : index
    %41 = vector.load %arg11[%c160, %c0_37] : memref<448x768xbf16, #tpu.memory_space<vmem>>, vector<16x768xbf16>
    tpu.vector_store %arg11[%c160, %c0_37], %40 {strides = array<i32>} : memref<448x768xbf16, #tpu.memory_space<vmem>>, vector<16x768xbf16>,
    %c0_38 = arith.constant 0 : index
    %c181 = arith.constant 181 : index
    %42 = vector.load %arg9[%c0_38, %c181] : memref<16x1280xbf16, #tpu.memory_space<vmem>>, vector<16x768xbf16>
    %c176 = arith.constant 176 : index
    %c0_39 = arith.constant 0 : index
    %43 = vector.load %arg11[%c176, %c0_39] : memref<448x768xbf16, #tpu.memory_space<vmem>>, vector<16x768xbf16>
    tpu.vector_store %arg11[%c176, %c0_39], %42 {strides = array<i32>} : memref<448x768xbf16, #tpu.memory_space<vmem>>, vector<16x768xbf16>,
    %c0_40 = arith.constant 0 : index
    %c253 = arith.constant 253 : index
    %44 = vector.load %arg9[%c0_40, %c253] : memref<16x1280xbf16, #tpu.memory_space<vmem>>, vector<16x768xbf16>
    %c192 = arith.constant 192 : index
    %c0_41 = arith.constant 0 : index
    %45 = vector.load %arg11[%c192, %c0_41] : memref<448x768xbf16, #tpu.memory_space<vmem>>, vector<16x768xbf16>
    tpu.vector_store %arg11[%c192, %c0_41], %44 {strides = array<i32>} : memref<448x768xbf16, #tpu.memory_space<vmem>>, vector<16x768xbf16>,
    %c0_42 = arith.constant 0 : index
    %c256_43 = arith.constant 256 : index
    %46 = vector.load %arg9[%c0_42, %c256_43] : memref<16x1280xbf16, #tpu.memory_space<vmem>>, vector<16x768xbf16>
    %c208 = arith.constant 208 : index
    %c0_44 = arith.constant 0 : index
    %47 = vector.load %arg11[%c208, %c0_44] : memref<448x768xbf16, #tpu.memory_space<vmem>>, vector<16x768xbf16>
    tpu.vector_store %arg11[%c208, %c0_44], %46 {strides = array<i32>} : memref<448x768xbf16, #tpu.memory_space<vmem>>, vector<16x768xbf16>,
    %c0_45 = arith.constant 0 : index
    %c259 = arith.constant 259 : index
    %48 = vector.load %arg9[%c0_45, %c259] : memref<16x1280xbf16, #tpu.memory_space<vmem>>, vector<16x768xbf16>
    %c224 = arith.constant 224 : index
    %c0_46 = arith.constant 0 : index
    %49 = vector.load %arg11[%c224, %c0_46] : memref<448x768xbf16, #tpu.memory_space<vmem>>, vector<16x768xbf16>
    tpu.vector_store %arg11[%c224, %c0_46], %48 {strides = array<i32>} : memref<448x768xbf16, #tpu.memory_space<vmem>>, vector<16x768xbf16>,
    %c0_47 = arith.constant 0 : index
    %c331 = arith.constant 331 : index
    %50 = vector.load %arg9[%c0_47, %c331] : memref<16x1280xbf16, #tpu.memory_space<vmem>>, vector<16x768xbf16>
    %c240 = arith.constant 240 : index
    %c0_48 = arith.constant 0 : index
    %51 = vector.load %arg11[%c240, %c0_48] : memref<448x768xbf16, #tpu.memory_space<vmem>>, vector<16x768xbf16>
    tpu.vector_store %arg11[%c240, %c0_48], %50 {strides = array<i32>} : memref<448x768xbf16, #tpu.memory_space<vmem>>, vector<16x768xbf16>,
    %c0_49 = arith.constant 0 : index
    %c334 = arith.constant 334 : index
    %52 = vector.load %arg9[%c0_49, %c334] : memref<16x1280xbf16, #tpu.memory_space<vmem>>, vector<16x768xbf16>
    %c256_50 = arith.constant 256 : index
    %c0_51 = arith.constant 0 : index
    %53 = vector.load %arg11[%c256_50, %c0_51] : memref<448x768xbf16, #tpu.memory_space<vmem>>, vector<16x768xbf16>
    tpu.vector_store %arg11[%c256_50, %c0_51], %52 {strides = array<i32>} : memref<448x768xbf16, #tpu.memory_space<vmem>>, vector<16x768xbf16>,
    %c0_52 = arith.constant 0 : index
    %c337 = arith.constant 337 : index
    %54 = vector.load %arg9[%c0_52, %c337] : memref<16x1280xbf16, #tpu.memory_space<vmem>>, vector<16x768xbf16>
    %c272 = arith.constant 272 : index
    %c0_53 = arith.constant 0 : index
    %55 = vector.load %arg11[%c272, %c0_53] : memref<448x768xbf16, #tpu.memory_space<vmem>>, vector<16x768xbf16>
    tpu.vector_store %arg11[%c272, %c0_53], %54 {strides = array<i32>} : memref<448x768xbf16, #tpu.memory_space<vmem>>, vector<16x768xbf16>,
    %c0_54 = arith.constant 0 : index
    %c121 = arith.constant 121 : index
    %56 = vector.load %arg9[%c0_54, %c121] : memref<16x1280xbf16, #tpu.memory_space<vmem>>, vector<16x768xbf16>
    %c288 = arith.constant 288 : index
    %c0_55 = arith.constant 0 : index
    %57 = vector.load %arg11[%c288, %c0_55] : memref<448x768xbf16, #tpu.memory_space<vmem>>, vector<16x768xbf16>
    tpu.vector_store %arg11[%c288, %c0_55], %56 {strides = array<i32>} : memref<448x768xbf16, #tpu.memory_space<vmem>>, vector<16x768xbf16>,
    %c0_56 = arith.constant 0 : index
    %c126 = arith.constant 126 : index
    %58 = vector.load %arg9[%c0_56, %c126] : memref<16x1280xbf16, #tpu.memory_space<vmem>>, vector<16x768xbf16>
    %c304 = arith.constant 304 : index
    %c0_57 = arith.constant 0 : index
    %59 = vector.load %arg11[%c304, %c0_57] : memref<448x768xbf16, #tpu.memory_space<vmem>>, vector<16x768xbf16>
    tpu.vector_store %arg11[%c304, %c0_57], %58 {strides = array<i32>} : memref<448x768xbf16, #tpu.memory_space<vmem>>, vector<16x768xbf16>,
    %c0_58 = arith.constant 0 : index
    %c131 = arith.constant 131 : index
    %60 = vector.load %arg9[%c0_58, %c131] : memref<16x1280xbf16, #tpu.memory_space<vmem>>, vector<16x768xbf16>
    %c320 = arith.constant 320 : index
    %c0_59 = arith.constant 0 : index
    %61 = vector.load %arg11[%c320, %c0_59] : memref<448x768xbf16, #tpu.memory_space<vmem>>, vector<16x768xbf16>
    tpu.vector_store %arg11[%c320, %c0_59], %60 {strides = array<i32>} : memref<448x768xbf16, #tpu.memory_space<vmem>>, vector<16x768xbf16>,
    %c0_60 = arith.constant 0 : index
    %c251 = arith.constant 251 : index
    %62 = vector.load %arg9[%c0_60, %c251] : memref<16x1280xbf16, #tpu.memory_space<vmem>>, vector<16x768xbf16>
    %c336 = arith.constant 336 : index
    %c0_61 = arith.constant 0 : index
    %63 = vector.load %arg11[%c336, %c0_61] : memref<448x768xbf16, #tpu.memory_space<vmem>>, vector<16x768xbf16>
    tpu.vector_store %arg11[%c336, %c0_61], %62 {strides = array<i32>} : memref<448x768xbf16, #tpu.memory_space<vmem>>, vector<16x768xbf16>,
    %c0_62 = arith.constant 0 : index
    %c256_63 = arith.constant 256 : index
    %64 = vector.load %arg9[%c0_62, %c256_63] : memref<16x1280xbf16, #tpu.memory_space<vmem>>, vector<16x768xbf16>
    %c352 = arith.constant 352 : index
    %c0_64 = arith.constant 0 : index
    %65 = vector.load %arg11[%c352, %c0_64] : memref<448x768xbf16, #tpu.memory_space<vmem>>, vector<16x768xbf16>
    tpu.vector_store %arg11[%c352, %c0_64], %64 {strides = array<i32>} : memref<448x768xbf16, #tpu.memory_space<vmem>>, vector<16x768xbf16>,
    %c0_65 = arith.constant 0 : index
    %c261 = arith.constant 261 : index
    %66 = vector.load %arg9[%c0_65, %c261] : memref<16x1280xbf16, #tpu.memory_space<vmem>>, vector<16x768xbf16>
    %c368 = arith.constant 368 : index
    %c0_66 = arith.constant 0 : index
    %67 = vector.load %arg11[%c368, %c0_66] : memref<448x768xbf16, #tpu.memory_space<vmem>>, vector<16x768xbf16>
    tpu.vector_store %arg11[%c368, %c0_66], %66 {strides = array<i32>} : memref<448x768xbf16, #tpu.memory_space<vmem>>, vector<16x768xbf16>,
    %c0_67 = arith.constant 0 : index
    %c381 = arith.constant 381 : index
    %68 = vector.load %arg9[%c0_67, %c381] : memref<16x1280xbf16, #tpu.memory_space<vmem>>, vector<16x768xbf16>
    %c384 = arith.constant 384 : index
    %c0_68 = arith.constant 0 : index
    %69 = vector.load %arg11[%c384, %c0_68] : memref<448x768xbf16, #tpu.memory_space<vmem>>, vector<16x768xbf16>
    tpu.vector_store %arg11[%c384, %c0_68], %68 {strides = array<i32>} : memref<448x768xbf16, #tpu.memory_space<vmem>>, vector<16x768xbf16>,
    %c0_69 = arith.constant 0 : index
    %c386 = arith.constant 386 : index
    %70 = vector.load %arg9[%c0_69, %c386] : memref<16x1280xbf16, #tpu.memory_space<vmem>>, vector<16x768xbf16>
    %c400 = arith.constant 400 : index
    %c0_70 = arith.constant 0 : index
    %71 = vector.load %arg11[%c400, %c0_70] : memref<448x768xbf16, #tpu.memory_space<vmem>>, vector<16x768xbf16>
    tpu.vector_store %arg11[%c400, %c0_70], %70 {strides = array<i32>} : memref<448x768xbf16, #tpu.memory_space<vmem>>, vector<16x768xbf16>,
    %c0_71 = arith.constant 0 : index
    %c391 = arith.constant 391 : index
    %72 = vector.load %arg9[%c0_71, %c391] : memref<16x1280xbf16, #tpu.memory_space<vmem>>, vector<16x768xbf16>
    %c416 = arith.constant 416 : index
    %c0_72 = arith.constant 0 : index
    %73 = vector.load %arg11[%c416, %c0_72] : memref<448x768xbf16, #tpu.memory_space<vmem>>, vector<16x768xbf16>
    tpu.vector_store %arg11[%c416, %c0_72], %72 {strides = array<i32>} : memref<448x768xbf16, #tpu.memory_space<vmem>>, vector<16x768xbf16>,
    %c0_73 = arith.constant 0 : index
    %c256_74 = arith.constant 256 : index
    %74 = vector.load %arg9[%c0_73, %c256_74] : memref<16x1280xbf16, #tpu.memory_space<vmem>>, vector<16x768xbf16>
    %c432 = arith.constant 432 : index
    %c0_75 = arith.constant 0 : index
    %75 = vector.load %arg11[%c432, %c0_75] : memref<448x768xbf16, #tpu.memory_space<vmem>>, vector<16x768xbf16>
    tpu.vector_store %arg11[%c432, %c0_75], %74 {strides = array<i32>} : memref<448x768xbf16, #tpu.memory_space<vmem>>, vector<16x768xbf16>,
    %c0_76 = arith.constant 0 : index
    %c0_77 = arith.constant 0 : index
    %76 = vector.load %arg5[%c0_76, %c0_77] : memref<16x448xbf16, #tpu.memory_space<vmem>>, vector<16x448xbf16>
    %c0_78 = arith.constant 0 : index
    %c0_79 = arith.constant 0 : index
    %77 = vector.load %arg11[%c0_78, %c0_79] : memref<448x768xbf16, #tpu.memory_space<vmem>>, vector<448x768xbf16>
    %cst_80 = arith.constant dense<0.000000e+00> : vector<16x768xf32>
    %78 = tpu.matmul %76, %77, %cst_80 {dimension_numbers = #tpu.dot_dimension_numbers<[1], [0], [0], [1], [0, 0, 1, 1], [], []>} : vector<16x448xbf16>, vector<448x768xbf16>, vector<16x768xf32> -> vector<16x768xf32>
    %cst_81 = arith.constant 0.999994993 : f32
    %79 = vector.broadcast %cst_81 : f32 to vector<16x768xf32>
    %80 = arith.mulf %78, %79 : vector<16x768xf32>
    %cst_82 = arith.constant 0.000000e+00 : f32
    %81 = vector.broadcast %cst_82 : f32 to vector<16x768xf32>
    %82 = arith.maximumf %80, %81 : vector<16x768xf32>
    %c0_83 = arith.constant 0 : index
    %c0_84 = arith.constant 0 : index
    %83 = vector.load %arg2[%c0_83, %c0_84] : memref<1x768xf32, #tpu.memory_space<vmem>>, vector<1x768xf32>
    %84 = vector.broadcast %83 : vector<1x768xf32> to vector<16x768xf32>
    %85 = arith.mulf %82, %84 : vector<16x768xf32>
    %cst_85 = arith.constant 0.000000e+00 : bf16
    %86 = vector.broadcast %cst_85 : bf16 to vector<16x1280xbf16>
    %c0_86 = arith.constant 0 : index
    %c0_87 = arith.constant 0 : index
    %87 = vector.load %arg10[%c0_86, %c0_87] : memref<16x1280xbf16, #tpu.memory_space<vmem>>, vector<16x1280xbf16>
    tpu.vector_store %arg10[%c0_86, %c0_87], %86 {strides = array<i32>} : memref<16x1280xbf16, #tpu.memory_space<vmem>>, vector<16x1280xbf16>,
    %88 = arith.truncf %85 : vector<16x768xf32> to vector<16x768xbf16>
    %c0_88 = arith.constant 0 : index
    %c256_89 = arith.constant 256 : index
    %89 = vector.load %arg10[%c0_88, %c256_89] : memref<16x1280xbf16, #tpu.memory_space<vmem>>, vector<16x768xbf16>
    tpu.vector_store %arg10[%c0_88, %c256_89], %88 {strides = array<i32>} : memref<16x1280xbf16, #tpu.memory_space<vmem>>, vector<16x768xbf16>,
    %c0_90 = arith.constant 0 : index
    %c255_91 = arith.constant 255 : index
    %90 = vector.load %arg10[%c0_90, %c255_91] : memref<16x1280xbf16, #tpu.memory_space<vmem>>, vector<16x768xbf16>
    %c0_92 = arith.constant 0 : index
    %c0_93 = arith.constant 0 : index
    %91 = vector.load %arg11[%c0_92, %c0_93] : memref<448x768xbf16, #tpu.memory_space<vmem>>, vector<16x768xbf16>
    tpu.vector_store %arg11[%c0_92, %c0_93], %90 {strides = array<i32>} : memref<448x768xbf16, #tpu.memory_space<vmem>>, vector<16x768xbf16>,
    %c0_94 = arith.constant 0 : index
    %c256_95 = arith.constant 256 : index
    %92 = vector.load %arg10[%c0_94, %c256_95] : memref<16x1280xbf16, #tpu.memory_space<vmem>>, vector<16x768xbf16>
    %c16_96 = arith.constant 16 : index
    %c0_97 = arith.constant 0 : index
    %93 = vector.load %arg11[%c16_96, %c0_97] : memref<448x768xbf16, #tpu.memory_space<vmem>>, vector<16x768xbf16>
    tpu.vector_store %arg11[%c16_96, %c0_97], %92 {strides = array<i32>} : memref<448x768xbf16, #tpu.memory_space<vmem>>, vector<16x768xbf16>,
    %c0_98 = arith.constant 0 : index
    %c257_99 = arith.constant 257 : index
    %94 = vector.load %arg10[%c0_98, %c257_99] : memref<16x1280xbf16, #tpu.memory_space<vmem>>, vector<16x768xbf16>
    %c32_100 = arith.constant 32 : index
    %c0_101 = arith.constant 0 : index
    %95 = vector.load %arg11[%c32_100, %c0_101] : memref<448x768xbf16, #tpu.memory_space<vmem>>, vector<16x768xbf16>
    tpu.vector_store %arg11[%c32_100, %c0_101], %94 {strides = array<i32>} : memref<448x768xbf16, #tpu.memory_space<vmem>>, vector<16x768xbf16>,
    %c0_102 = arith.constant 0 : index
    %c0_103 = arith.constant 0 : index
    %96 = vector.load %arg6[%c0_102, %c0_103] : memref<16x48xbf16, #tpu.memory_space<vmem>>, vector<16x48xbf16>
    %c0_104 = arith.constant 0 : index
    %c0_105 = arith.constant 0 : index
    %97 = vector.load %arg11[%c0_104, %c0_105] : memref<448x768xbf16, #tpu.memory_space<vmem>>, vector<48x768xbf16>
    %cst_106 = arith.constant dense<0.000000e+00> : vector<16x768xf32>
    %98 = tpu.matmul %96, %97, %cst_106 {dimension_numbers = #tpu.dot_dimension_numbers<[1], [0], [0], [1], [0, 0, 1, 1], [], []>} : vector<16x48xbf16>, vector<48x768xbf16>, vector<16x768xf32> -> vector<16x768xf32>
    %c0_107 = arith.constant 0 : index
    %c0_108 = arith.constant 0 : index
    %99 = vector.load %arg7[%c0_107, %c0_108] : memref<16x8xf32, #tpu.memory_space<vmem>>, vector<16x8xf32>
    %100 = vector.extract_strided_slice %5 {offsets = [0, 256], sizes = [8, 768], strides = [1, 1]} : vector<8x1280xf32> to vector<8x768xf32>
    %cst_109 = arith.constant dense<0.000000e+00> : vector<16x768xf32>
    %101 = tpu.matmul %99, %100, %cst_109 {dimension_numbers = #tpu.dot_dimension_numbers<[1], [0], [0], [1], [0, 0, 1, 1], [], []>} : vector<16x8xf32>, vector<8x768xf32>, vector<16x768xf32> -> vector<16x768xf32>
    %102 = arith.addf %98, %101 : vector<16x768xf32>
    %c0_110 = arith.constant 0 : index
    %c0_111 = arith.constant 0 : index
    %c0_112 = arith.constant 0 : index
    %103 = vector.load %arg8[%c0_110, %c0_111, %c0_112] : memref<1x16x768xf32, #tpu.memory_space<vmem>>, vector<1x16x768xf32>
    %104 = vector.shape_cast %103 : vector<1x16x768xf32> to vector<16x768xf32>
    %105 = vector.shape_cast %102 : vector<16x768xf32> to vector<1x16x768xf32>
    tpu.vector_store %arg8[%c0_110, %c0_111, %c0_112], %105 {strides = array<i32>} : memref<1x16x768xf32, #tpu.memory_space<vmem>>, vector<1x16x768xf32>,
    return
  }
  func.func @transform_0(%arg0: i32) -> (i32, i32, i32) {
    %c0_i32 = arith.constant 0 : i32
    %c0_i32_0 = arith.constant 0 : i32
    %c0_i32_1 = arith.constant 0 : i32
    return %arg0, %c0_i32, %c0_i32_0 : i32, i32, i32
  }
  func.func @transform_1(%arg0: i32) -> (i32, i32) {
    %c0_i32 = arith.constant 0 : i32
    %c0_i32_0 = arith.constant 0 : i32
    %c0_i32_1 = arith.constant 0 : i32
    return %c0_i32, %c0_i32_0 : i32, i32
  }
  func.func @transform_2(%arg0: i32) -> (i32, i32) {
    %c0_i32 = arith.constant 0 : i32
    %c0_i32_0 = arith.constant 0 : i32
    %c0_i32_1 = arith.constant 0 : i32
    return %c0_i32, %c0_i32_0 : i32, i32
  }
  func.func @transform_3(%arg0: i32) -> (i32, i32) {
    %c0_i32 = arith.constant 0 : i32
    %c0_i32_0 = arith.constant 0 : i32
    %c0_i32_1 = arith.constant 0 : i32
    return %c0_i32, %c0_i32_0 : i32, i32
  }
  func.func @transform_4(%arg0: i32) -> (i32, i32) {
    %c0_i32 = arith.constant 0 : i32
    %c0_i32_0 = arith.constant 0 : i32
    %c0_i32_1 = arith.constant 0 : i32
    return %c0_i32, %c0_i32_0 : i32, i32
  }
  func.func @transform_5(%arg0: i32) -> (i32, i32) {
    %c0_i32 = arith.constant 0 : i32
    %c0_i32_0 = arith.constant 0 : i32
    %c0_i32_1 = arith.constant 0 : i32
    return %c0_i32, %c0_i32_0 : i32, i32
  }
  func.func @transform_6(%arg0: i32) -> (i32, i32) {
    %c0_i32 = arith.constant 0 : i32
    %c0_i32_0 = arith.constant 0 : i32
    %c0_i32_1 = arith.constant 0 : i32
    return %c0_i32, %c0_i32_0 : i32, i32
  }
  func.func @transform_7(%arg0: i32) -> (i32, i32, i32) {
    %c0_i32 = arith.constant 0 : i32
    %c0_i32_0 = arith.constant 0 : i32
    %c0_i32_1 = arith.constant 0 : i32
    return %arg0, %c0_i32, %c0_i32_0 : i32, i32, i32
  }
}

</mosaic_0001>

<bundles_post_ra>
// kernel: tpu_custom_call.1
= control target key start
LH: loop header
LB: loop body
LE: loop exit
PB: predicated region body
PF: predicated region fallthrough
CT: control target
= control target key end

     0   :  { %s5227_s0 = inlined_call_operand.hbm [shape: f32[2,8,1280], index: 0, kind: input, shape index: {}]   ;;  %s5228_s1 = inlined_call_operand.vmem [shape: f32[1,768], index: 1, kind: input, shape index: {}]   ;;  %s5229_s2 = inlined_call_operand.vmem [shape: f32[2,8], index: 2, kind: input, shape index: {}]   ;;  %s5230_s3 = inlined_call_operand.vmem [shape: f32[16,2], index: 3, kind: input, shape index: {}]   ;;  %s5231_s4 = inlined_call_operand.vmem [shape: bf16[16,448], index: 4, kind: input, shape index: {}]   ;;  %s5232_s5 = inlined_call_operand.vmem [shape: bf16[16,48], index: 5, kind: input, shape index: {}]   ;;  %s5233_s6 = inlined_call_operand.vmem [shape: f32[16,8], index: 6, kind: input, shape index: {}]   ;;  %s5234_s7 = inlined_call_operand.hbm [shape: f32[2,16,768], index: 7, kind: output, shape index: {}]  }
   0x1   :  { %5320 = sst [smem:[#allocation39_spill]] %s5227_s0 }
   0x2   :  { %5321 = sst [smem:[#allocation40_spill]] %s5229_s2 }
   0x3   :  { %5322 = sst [smem:[#allocation41_spill]] %s5230_s3 }
   0x4   :  { %12 = vsyncpa [#allocation6], 0 }
   0x5   :  { %14 = vsyncpa [#allocation6 + $0x1], 0 }
   0x6   :  { %15 = vsyncpa [#allocation7], 0 }
   0x7   :  { %17 = vsyncpa [#allocation7 + $0x1], 0  ;;  %s3820_s24 = smov 0   ;;  %s3822_s25 = smov 0  }
   0x8   :  { %s3824_s26 = smov 0   ;;  %s3826_s27 = smov 0  }
   0x9 LB: > { %5323 = sst [smem:[#allocation11_spill]] %s3742_s25  ;;  %s3841_s28 = sadd.s32 4294967295, %s3750_s27   ;;  %s3750_s27 = sphi %s3826_s27, %s5448_s27   ;;  %s3746_s26 = sphi %s3824_s26, %s5451_s26   ;;  %s3742_s25 = sphi %s3822_s25, %s5450_s25   ;;  %s3738_s24 = sphi %s3820_s24, %s5449_s24  }
   0xa   : > { %5324 = sst [smem:[#allocation12_spill]] %s3746_s26  ;;  %s3508_s29 = sadd.s32 4294967294, %s3750_s27  }
   0xb   : > { %5325 = sst [smem:[#allocation13_spill]] %s3750_s27  ;;  %s3845_s30 = sadd.s32 1, %s3750_s27  }
   0xc   : > { %5326 = sst [smem:[#allocation14_spill]] %s3845_s30  ;;  %s30_s8 = sadd.s32 1, %s3746_s26 }
   0xd   : > { %s27_s9 = ssub.s32 %s3750_s27, %s3845_s30  ;;  %p37_p0 = scmp.ne.s32.totalorder %s3746_s26, %s3742_s25 }
   0xe   : > { %p28_p1 = scmp.eq.s32.totalorder %s27_s9, 0  ;;  %p38_p2 = scmp.eq.s32.totalorder %s3750_s27, 0 }
   0xf   : > { %p43_p3 = scmp.ne.s32.totalorder %s3742_s25, %s3738_s24  ;;  %p44_p4 = scmp.eq.s32.totalorder %s3841_s28, 0 }
  0x10   : > { %s3857_s10 = scalar_select %p28_p1, %s3746_s26, %s30_s8  }
  0x11   : > { %p39_p5 = por %p38_p2, %p37_p0  ;;  %p3859_p6 = por %p44_p4, %p43_p3 }
  0x12   : > { %5327 = sst [smem:[#allocation15_spill]] %s3857_s10  ;;  %p193_p7 = scmp.eq.s32.totalorder %s3841_s28, 1 }
  0x13   : > { %p199_p8 = scmp.eq.s32.totalorder %s3508_s29, 1  ;;  %p3587_p10 = scmp.lt.s32.totalorder %s3750_s27, 2 }
  0x14   : > { %p3866_p11 = por %p193_p7, %p37_p0  ;;  %s237_s14 = sand.u32 1, %s3746_s26  }
  0x15   : > { %p3870_p12 = por %p199_p8, %p43_p3  ;;  %s3571_s15 = smul.u32 1280, %s3750_s27 }
  0x16   : > { %s5329_s12 = scalar_select %p3866_p11, 1, 0 }
  0x17   : > { %s5330_s13 = scalar_select %p3870_p12, 1, 0 }
  0x18   : > { %s3570_s16 = smul.u32 80, %s237_s14  ;;  %s5331_s0 = sld [smem:[#allocation39_spill]] }
  0x19   : > { %p3881_p13 = pnand %p3587_p10, %p39_p5  ;;  %s238_s23 = scalar_lea.sflag [#allocation6], %s237_s14 }
  0x1a   : > { %s241_s21 = scalar_lea.vmem [#allocation5], %s3570_s16 }
  0x1b   : > { %s249_s22 = sshll.u32 %s241_s21, 4  ;;  %p3656_p3 = pneg %p3881_p13  ;;  %s3886_s22 = int_to_ptr.vmem [resolvable:$true] %s249_s22 }
  0x1e   : > { %s3879_s19 = scalar_lea.hbm %s5331_s0, %s3571_s15  ;;  %s3659_s15 = scalar_lea.hbm %s5331_s0, 2560 }
  0x1f   : > { %s3654_s29 = scalar_lea.hbm %s3879_s19, 1280  ;;  %p3660_p7 = scmp.lt.u32.totalorder %s3879_s19, %s5331_s0 }
  0x20   : > { %p3655_p2 = scmp.ne.s32.totalorder %s3879_s19, %s3654_s29  ;;  %p3661_p8 = scmp.lt.u32.totalorder %s3659_s15, %s3654_s29 }
  0x21   : > { %p3663_p9 = scmp.lt.u32.totalorder %s3654_s29, %s3879_s19 }
  0x22   : > { %p3657_p4 = pnand %p3656_p3, %p3655_p2  ;;  %p3662_p10 = por %p3661_p8, %p3660_p7 }
  0x24   : > { %p3658_p5 = pneg %p3657_p4  ;;  %p3664_p0 = por %p3663_p9, %p3662_p10 }
  0x26   : > { %p3665_p1 = pnand %p3664_p0, %p3658_p5 }
  0x28   : > { %3668 = shalt.err (!%p3665_p1)
}
  0x29   : > { %s3669_s14 = scalar_lea.vmem %s3886_s22, 1280  ;;  %s3752_s16 = smov [#allocation5]  }
  0x2a   : > { %p3670_p2 = scmp.ne.s32.totalorder %s3886_s22, %s3669_s14  ;;  %s3674_s21 = sshll.u32 %s3752_s16, 4  ;;  %s3675_s21 = int_to_ptr.vmem [resolvable:$false] %s3674_s21 }
  0x2b   : > { %s3676_s8 = scalar_lea.vmem %s3675_s21, 2560  ;;  %p3677_p11 = scmp.lt.s32.totalorder %s3886_s22, %s3675_s21 }
  0x2c   : > { %p3672_p4 = pnand %p3670_p2, %p3656_p3  ;;  %p3678_p7 = scmp.lt.s32.totalorder %s3676_s8, %s3669_s14 }
  0x2e   : > { %p3673_p12 = pneg %p3672_p4  ;;  %p3679_p8 = por %p3678_p7, %p3677_p11 }
  0x30   : > { %p3680_p9 = pnand %p3679_p8, %p3673_p12 }
  0x32   : > { %3683 = shalt.err (!%p3680_p9)
}
  0x33   : > { %3582 = dma.hbm_to_vmem [thread:$0]  (!%p3881_p13), %s3879_s19, 1280, %s3886_s22, %s238_s23  }
  0x34   : > { %p5333_p0 = scmp.lt.s32.totalorder %s3750_s27, 3  ;;  %p5334_p1 = scmp.ge.s32.totalorder %s3750_s27, 1 }
  0x36   : > { %p255_p3 = pnand %p5334_p1, %p5333_p0 }
  0x38   : > { %258 = sbr.rel (%p255_p3) target bundleno = 1560 (0x618), region = 48 }
  0x3f   : > { %s3919_s29 = sand.u32 1, %s3742_s25  }
  0x40   : > { %s3572_s9 = smul.u32 80, %s3919_s29  ;;  %s261_s15 = scalar_lea.sflag [#allocation6], %s3919_s29 }
  0x42   : > { %s3923_s17 = scalar_lea.vmem [#allocation5], %s3572_s9 }
  0x43   : > { %3729 = dma.done.wait (%p3859_p6), %s261_s15, 1280  }
  0x44   : > { %3731 = vsyncadd (%p3859_p6), %s261_s15, 4294966016  ;;  %v5289_v0 = vmov 0.0   ;;  %v297_v1 = vld [vmem:[%s3923_s17 + $0x8] sm:$0xff]  ;;  %v296_v2 = vld [vmem:[%s3923_s17] sm:$0xff]  ;;  %vm5308_vm0 = vcmask 64512   ;;  %s5337_s2 = sld [smem:[#allocation40_spill]] }
  0x45   : > { %395 = vmatprep.mubr.f32.mxu1 %v5289_v0  ;;  %1041 = vmatprep.mubr.f32.mxu0 %v5289_v0  ;;  %v307_v3 = vmul.f32 0.999995, %v297_v1  ;;  %v306_v4 = vmul.f32 0.999995, %v296_v2  ;;  %v299_v5 = vld [vmem:[%s3923_s17 + $0x18] sm:$0xff]  ;;  %v298_v6 = vld [vmem:[%s3923_s17 + $0x10] sm:$0xff] }
  0x46   : > { %v3935_v7 = vmul.f32 0.999995, %v299_v5  ;;  %v3937_v8 = vmul.f32 0.999995, %v298_v6  ;;  %v301_v9 = vld [vmem:[%s3923_s17 + $0x28] sm:$0xff]  ;;  %v300_v10 = vld [vmem:[%s3923_s17 + $0x20] sm:$0xff] }
  0x47   : > { %v317_v11 = vmax.f32 %v307_v3, 0.0  ;;  %v316_v12 = vmax.f32 %v306_v4, 0.0  ;;  %v3944_v14 = vmul.f32 0.999995, %v301_v9  ;;  %v3948_v17 = vmul.f32 0.999995, %v300_v10 }
  0x48   : > { %5335 = vst [vmem:[#allocation16_spill] sm:$0xff] %v3935_v7  ;;  %5336 = vst [vmem:[#allocation17_spill] sm:$0xff] %v3937_v8  ;;  %v5292_v15 = vmax.f32 %v3935_v7, 0.0  ;;  %v5291_v16 = vmax.f32 %v3937_v8, 0.0  ;;  %v303_v18 = vld [vmem:[%s3923_s17 + $0x38] sm:$0xff]  ;;  %v302_v21 = vld [vmem:[%s3923_s17 + $0x30] sm:$0xff] }
  0x49   : > { %5338 = vst [vmem:[#allocation18_spill] sm:$0xff] %v3944_v14  ;;  %5339 = vst [vmem:[#allocation19_spill] sm:$0xff] %v3948_v17  ;;  %331 = vmatprep.subr.mxu1 %v317_v11  ;;  %v5288_v19 = vmax.f32 %v3944_v14, 0.0  ;;  %v3952_v20 = vmul.f32 0.999995, %v303_v18  ;;  %v5287_v22 = vmax.f32 %v3948_v17, 0.0 }
  0x4a   : > { %v326_v13 = vld [vmem:[%s5337_s2] sm:$0x3]  ;;  %332 = vmatpush1.msra.mxu1 %v316_v12  ;;  %v3962_v23 = vmul.f32 0.999995, %v302_v21  ;;  %v305_v26 = vld [vmem:[%s3923_s17 + $0x48] sm:$0xff]  ;;  %vm715_vm1 = vcmask 1041408  }
  0x4b   : > { %5340 = vst [vmem:[#allocation20_spill] sm:$0xff] %v3952_v20  ;;  %3513 = vmatmul.mubr.msk.f32.vlgmr.msra.gmra.mrb[0].mxu1 %vm5308_vm0, %v326_v13  ;;  %402 = vmatprep.subr.mxu1 %v5292_v15  ;;  %v5286_v24 = vmax.f32 %v3952_v20, 0.0  ;;  %v315_v27 = vmul.f32 0.999995, %v305_v26  ;;  %v304_v28 = vld [vmem:[%s3923_s17 + $0x40] sm:$0xff]  ;;  %s5342_s3 = sld [smem:[#allocation41_spill]] }
  0x4c   : > { %403 = vmatpush1.msra.mxu1 %v5291_v16  ;;  %466 = vmatprep.mubr.f32.mxu1 %v5289_v0  ;;  %5341 = vst [vmem:[#allocation21_spill] sm:$0xff] %v3962_v23  ;;  %v5285_v25 = vmax.f32 %v3962_v23, 0.0  ;;  %v314_v29 = vmul.f32 0.999995, %v304_v28  ;;  %vm5315_vm2 = vcmask 15360   ;;  %s5254_s14 = smov 2  }
  0x4d   : > { %473 = vmatprep.subr.mxu1 %v5288_v19  ;;  %v325_v30 = vmax.f32 %v315_v27, 0.0  ;;  %s5236_s16 = smov 7   ;;  %s5240_s21 = smov 25   ;;  %vm1219_vm3 = vcmask 220160   ;;  %vm1266_vm4 = vcmask 211968   ;;  %vm1313_vm5 = vcmask 203776  }
  0x4e   : > { %v324_v31 = vmax.f32 %v314_v29, 0.0  ;;  %s5238_s8 = smov 27   ;;  %s5244_s9 = smov 81   ;;  %vm1360_vm6 = vcmask 7168   ;;  %vm1419_vm7 = vcmask 1039360   ;;  %vm1466_vm8 = vcmask 842752  }
  0x4f   : > { %3514 = vmatmul.mubr.msk.f32.vlgmr.msra.gmra.mrb[2].mxu1 %vm5308_vm0, %v326_v13  ;;  %s5262_s15 = smov 26   ;;  %s5246_s17 = smov 75   ;;  %vm1513_vm9 = vcmask 834560   ;;  %vm1560_vm10 = vcmask 826368   ;;  %vm1607_vm11 = vcmask 662528   ;;  %vm1654_vm12 = vcmask 637952  }
  0x50   : > { %474 = vmatpush1.msra.mxu1 %v5287_v22  ;;  %537 = vmatprep.mubr.f32.mxu1 %v5289_v0  ;;  %s5268_s11 = smov 1   ;;  %s5248_s19 = smov 78   ;;  %vm5311_vm13 = vcmask 613376   ;;  %vm1748_vm14 = vcmask 23552   ;;  %vm1807_vm15 = vcmask 1022976  }
  0x51   : > { %544 = vmatprep.subr.mxu1 %v5286_v24  ;;  %v706_v39 = vld [vmem:[%s5342_s3] sm:$0xff]  ;;  %v707_v46 = vld [vmem:[%s5342_s3 + $0x8] sm:$0xff]  ;;  %s5264_s20 = smov 125   ;;  %s5274_s22 = smov 3  }
  0x52   : > { %s5258_s23 = smov 5   ;;  %s5270_s18 = smov 127  }
  0x53   : > { %3515 = vmatmul.mubr.msk.f32.vlgmr.msra.gmra.mrb[4].mxu1 %vm5308_vm0, %v326_v13  ;;  %s5354_s0 = smov 5   ;;  %s5276_s2 = smov 121  }
  0x54   : > { %545 = vmatpush1.msra.mxu1 %v5285_v25  ;;  %608 = vmatprep.mubr.f32.mxu1 %v5289_v0  ;;  %s5278_s3 = smov 126   ;;  %s5359_s10 = smov 103  }
  0x55   : > { %615 = vmatprep.subr.mxu1 %v325_v30  ;;  %s5361_s30 = smov 3   ;;  %s5363_s27 = smov 53  }
  0x56   : > { %s5364_s25 = smov 126   ;;  %s5365_s26 = smov 121  }
  0x57   : > { %3516 = vmatmul.mubr.msk.f32.vlgmr.msra.gmra.mrb[6].mxu1 %vm5308_vm0, %v326_v13  ;;  %p5444_p11 = scmp.ne.s32.totalorder %s5329_s12, 0 }
  0x58   : > { %679 = vmatprep.mubr.f32.mxu1 %v5289_v0  ;;  %616 = vmatpush1.msra.mxu1 %v324_v31 }
  0x5b   : > { %3517 = vmatmul.mubr.msk.f32.vlgmr.msra.gmra.mrb[8].mxu1 %vm5308_vm0, %v326_v13  ;;  %vm5313_vm0 = vcmask 408576  }
  0x5c   : > { %810 = vmatprep.mubr.f32.mxu1 %v5289_v0 }
 0x11e   : > { %v397_v32 = vpop.f32.mrb[0].mxu1 }
 0x11f   : > { %v686_v33 = vmul.f32 0.999995, %v397_v32  ;;  %v399_v34 = vpop.f32.mrb[1].mxu1 }
 0x120   : > { %v687_v35 = vmul.f32 0.999995, %v399_v34 }
 0x121   : > { %v696_v38 = vmax.f32 %v686_v33, 0.0 }
 0x122   : > { %v697_v36 = vmax.f32 %v687_v35, 0.0  ;;  %v468_v37 = vpop.f32.mrb[2].mxu1 }
 0x123   : > { %v688_v40 = vmul.f32 0.999995, %v468_v37  ;;  %v470_v41 = vpop.f32.mrb[3].mxu1 }
 0x124   : > { %3518 = vmatprep.subr.msk.mxu1 %vm715_vm1, %v697_v36  ;;  %v689_v42 = vmul.f32 0.999995, %v470_v41 }
 0x125   : > { %3519 = vmatpush1.msk.msra.mxu1 %vm715_vm1, %v696_v38  ;;  %v698_v43 = vmax.f32 %v688_v40, 0.0 }
 0x126   : > { %3520 = vmatmul.mubr.msk.f32.vlgmr.msra.gmra.mrb[10].mxu1 %vm5315_vm2, %v706_v39  ;;  %v699_v44 = vmax.f32 %v689_v42, 0.0  ;;  %v539_v45 = vpop.f32.mrb[4].mxu1 }
 0x127   : > { %816 = vmatprep.mubr.f32.mxu1 %v5289_v0  ;;  %v690_v47 = vmul.f32 0.999995, %v539_v45  ;;  %v541_v48 = vpop.f32.mrb[5].mxu1 }
 0x128   : > { %3522 = vmatprep.subr.msk.mxu1 %vm715_vm1, %v699_v44  ;;  %v691_v49 = vmul.f32 0.999995, %v541_v48 }
 0x129   : > { %3523 = vmatpush1.msk.msra.mxu1 %vm715_vm1, %v698_v43  ;;  %v700_v52 = vmax.f32 %v690_v47, 0.0 }
 0x12a   : > { %3521 = vmatmul.mubr.msk.f32.gmra.mrb[12].mxu1 %vm5315_vm2, %v707_v46  ;;  %v701_v50 = vmax.f32 %v691_v49, 0.0  ;;  %v610_v51 = vpop.f32.mrb[6].mxu1 }
 0x12b   : > { %887 = vmatprep.mubr.f32.mxu1 %v5289_v0  ;;  %v692_v53 = vmul.f32 0.999995, %v610_v51  ;;  %v612_v54 = vpop.f32.mrb[7].mxu1 }
 0x12c   : > { %v693_v55 = vmul.f32 0.999995, %v612_v54  ;;  %3526 = vmatprep.subr.msk.mxu1 %vm715_vm1, %v701_v50 }
 0x12d   : > { %v702_v56 = vmax.f32 %v692_v53, 0.0 }
 0x12e   : > { %3524 = vmatmul.mubr.msk.f32.vlgmr.msra.gmra.mrb[14].mxu1 %vm5315_vm2, %v706_v39  ;;  %v703_v57 = vmax.f32 %v693_v55, 0.0  ;;  %v681_v58 = vpop.f32.mrb[8].mxu1 }
 0x12f   : > { %893 = vmatprep.mubr.f32.mxu1 %v5289_v0  ;;  %3527 = vmatpush1.msk.msra.mxu1 %vm715_vm1, %v700_v52  ;;  %v694_v59 = vmul.f32 0.999995, %v681_v58  ;;  %v683_v60 = vpop.f32.mrb[9].mxu1 }
 0x130   : > { %3530 = vmatprep.subr.msk.mxu0 %vm715_vm1, %v703_v57  ;;  %v695_v61 = vmul.f32 0.999995, %v683_v60 }
 0x131   : > { %3531 = vmatpush1.msk.msra.mxu0 %vm715_vm1, %v702_v56  ;;  %v704_v62 = vmax.f32 %v694_v59, 0.0 }
 0x132   : > { %3525 = vmatmul.mubr.msk.f32.gmra.mrb[16].mxu1 %vm5315_vm2, %v707_v46  ;;  %3532 = vmatmul.mubr.msk.f32.vlgmr.msra.gmra.mrb[0].mxu0 %vm5315_vm2, %v706_v39  ;;  %v705_v63 = vmax.f32 %v695_v61, 0.0 }
 0x133   : > { %1047 = vmatprep.mubr.f32.mxu0 %v5289_v0  ;;  %964 = vmatprep.mubr.f32.mxu1 %v5289_v0 }
 0x134   : > { %3534 = vmatprep.subr.msk.mxu1 %vm715_vm1, %v705_v63 }
 0x136   : > { %3533 = vmatmul.mubr.msk.f32.gmra.mrb[2].mxu0 %vm5315_vm2, %v707_v46  ;;  %3528 = vmatmul.mubr.msk.f32.vlgmr.msra.gmra.mrb[18].mxu1 %vm5315_vm2, %v706_v39 }
 0x137   : > { %970 = vmatprep.mubr.f32.mxu1 %v5289_v0  ;;  %3535 = vmatpush1.msk.msra.mxu1 %vm715_vm1, %v704_v62  ;;  %vm5310_vm1 = vcmask 433152  }
 0x13a   : > { %3529 = vmatmul.mubr.msk.f32.gmra.mrb[20].mxu1 %vm5315_vm2, %v707_v46 }
 0x13b   : > { %1118 = vmatprep.mubr.f32.mxu1 %v5289_v0 }
 0x13e   : > { %3536 = vmatmul.mubr.msk.f32.vlgmr.msra.gmra.mrb[22].mxu1 %vm5315_vm2, %v706_v39 }
 0x13f   : > { %1124 = vmatprep.mubr.f32.mxu1 %v5289_v0 }
 0x142   : > { %3537 = vmatmul.mubr.msk.f32.gmra.mrb[24].mxu1 %vm5315_vm2, %v707_v46 }
 0x1f9   : > { %v812_v1 = vpop.f32.mrb[10].mxu1 }
 0x1fa   : > { %v814_v2 = vpop.f32.mrb[11].mxu1  ;;  %v1131_v3 = vmul.f32 0.999995, %v812_v1 }
 0x1fb   : > { %v1132_v4 = vmul.f32 0.999995, %v814_v2 }
 0x1fc   : > { %v1151_v11 = vmax.f32 %v1131_v3, 0.0 }
 0x1fd   : > { %v818_v5 = vpop.f32.mrb[12].mxu1  ;;  %v1152_v13 = vmax.f32 %v1132_v4, 0.0 }
 0x1fe   : > { %v1141_v6 = vmul.f32 0.999995, %v818_v5  ;;  %v820_v9 = vpop.f32.mrb[13].mxu1 }
 0x1ff   : > { %v1142_v10 = vmul.f32 0.999995, %v820_v9 }
 0x200   : > { %v1161_v12 = vmax.f32 %v1141_v6, 0.0 }
 0x201   : > { %v1162_v18 = vmax.f32 %v1142_v10, 0.0  ;;  %v889_v21 = vpop.f32.mrb[14].mxu1 }
 0x202   : > { %v1171_v26 = vpack.c.bf16 %v1161_v12, %v1151_v11  ;;  %v1133_v27 = vmul.f32 0.999995, %v889_v21  ;;  %v891_v28 = vpop.f32.mrb[15].mxu1 }
 0x203   : > { %v4018_v29 = vpack.c.bf16 %v1162_v18, %v1152_v13  ;;  %v1134_v30 = vmul.f32 0.999995, %v891_v28 }
 0x204   : > { %2028 = vrot.lane.b32.xlu1 %v1171_v26, %s5254_s14  ;;  %1981 = vrot.lane.b32.xlu0 %v1171_v26, %s5236_s16  ;;  %v1153_v31 = vmax.f32 %v1133_v27, 0.0 }
 0x205   : > { %v895_v32 = vpop.f32.mrb[16].mxu1  ;;  %v1043_v33 = vpop.f32.mrb[0].mxu0  ;;  %v1154_v38 = vmax.f32 %v1134_v30, 0.0 }
 0x206   : > { %v1143_v34 = vmul.f32 0.999995, %v895_v32  ;;  %v897_v35 = vpop.f32.mrb[17].mxu1  ;;  %v1137_v36 = vmul.f32 0.999995, %v1043_v33  ;;  %v1045_v37 = vpop.f32.mrb[1].mxu0 }
 0x207   : > { %v1144_v39 = vmul.f32 0.999995, %v897_v35  ;;  %v1138_v40 = vmul.f32 0.999995, %v1045_v37 }
 0x208   : > { %1299 = vrot.lane.b32.xlu0 %v4018_v29, %s5240_s21  ;;  %1205 = vrot.lane.b32.xlu1 %v4018_v29, %s5238_s8  ;;  %v1163_v41 = vmax.f32 %v1143_v34, 0.0  ;;  %v1157_v43 = vmax.f32 %v1137_v36, 0.0 }
 0x209   : > { %v1164_v42 = vmax.f32 %v1144_v39, 0.0  ;;  %v1049_v44 = vpop.f32.mrb[2].mxu0  ;;  %v966_v45 = vpop.f32.mrb[18].mxu1  ;;  %v1158_v52 = vmax.f32 %v1138_v40, 0.0 }
 0x20a   : > { %v4026_v46 = vpack.c.bf16 %v1163_v41, %v1153_v31  ;;  %v1147_v47 = vmul.f32 0.999995, %v1049_v44  ;;  %v1051_v48 = vpop.f32.mrb[3].mxu0  ;;  %v1135_v49 = vmul.f32 0.999995, %v966_v45  ;;  %v968_v50 = vpop.f32.mrb[19].mxu1 }
 0x20b   : > { %v4028_v51 = vpack.c.bf16 %v1164_v42, %v1154_v38  ;;  %v1148_v53 = vmul.f32 0.999995, %v1051_v48  ;;  %v1136_v54 = vmul.f32 0.999995, %v968_v50 }
 0x20c   : > { %1593 = vrot.lane.b32.xlu0 %v4018_v29, %s5244_s9  ;;  %1252 = vrot.lane.b32.xlu1 %v4018_v29, %s5262_s15  ;;  %v1167_v55 = vmax.f32 %v1147_v47, 0.0  ;;  %v1155_v59 = vmax.f32 %v1135_v49, 0.0 }
 0x20d   : > { %v1168_v56 = vmax.f32 %v1148_v53, 0.0  ;;  %v972_v57 = vpop.f32.mrb[20].mxu1  ;;  %v1156_v63 = vmax.f32 %v1136_v54, 0.0 }
 0x20e   : > { %v4034_v58 = vpack.c.bf16 %v1167_v55, %v1157_v43  ;;  %v1145_v60 = vmul.f32 0.999995, %v972_v57  ;;  %v974_v61 = vpop.f32.mrb[21].mxu1 }
 0x20f   : > { %v4036_v62 = vpack.c.bf16 %v1168_v56, %v1158_v52  ;;  %v1146_v1 = vmul.f32 0.999995, %v974_v61 }
 0x210   : > { %1687 = vrot.lane.b32.xlu0 %v4018_v29, %s5246_s17  ;;  %1346 = vrot.lane.b32.xlu1 %v4018_v29, %s5268_s11  ;;  %v1165_v2 = vmax.f32 %v1145_v60, 0.0 }
 0x211   : > { %v1166_v3 = vmax.f32 %v1146_v1, 0.0  ;;  %v1120_v6 = vpop.f32.mrb[22].mxu1  ;;  %v4257_v1 = vld [vmem:[%s5231_s4 + $0x4] ss:$16 sps:$4 sm:$0xff]  }
 0x212   : > { %v4042_v4 = vpack.c.bf16 %v1165_v2, %v1155_v59  ;;  %v1122_v9 = vpop.f32.mrb[23].mxu1  ;;  %v1139_v10 = vmul.f32 0.999995, %v1120_v6  ;;  %5360 = vst [vmem:[#allocation22_spill] sm:$0xff] %v4257_v1  ;;  %2592 = vmatprep.mubr.bf16.mxu0 %v4257_v1  ;;  %2678 = vmatprep.mubr.bf16.mxu1 %v4257_v1 }
 0x213   : > { %v4044_v5 = vpack.c.bf16 %v1166_v3, %v1156_v63  ;;  %v1140_v12 = vmul.f32 0.999995, %v1122_v9 }
 0x214   : > { %1983 = vrot.lane.b32.xlu0 %v4018_v29, %s5236_s16  ;;  %1640 = vrot.lane.b32.xlu1 %v4018_v29, %s5248_s19  ;;  %s5242_s16 = smov 102   ;;  %v1159_v21 = vmax.f32 %v1139_v10, 0.0 }
 0x215   : > { %v1126_v11 = vpop.f32.mrb[24].mxu1  ;;  %v1160_v27 = vmax.f32 %v1140_v12, 0.0 }
 0x216   : > { %v1149_v13 = vmul.f32 0.999995, %v1126_v11  ;;  %v1128_v18 = vpop.f32.mrb[25].mxu1 }
 0x217   : > { %v1150_v26 = vmul.f32 0.999995, %v1128_v18 }
 0x218   : > { %2075 = vrot.lane.b32.xlu0 %v4018_v29, %s5264_s20  ;;  %1734 = vrot.lane.b32.xlu1 %v4018_v29, %s5274_s22  ;;  %v1169_v28 = vmax.f32 %v1149_v13, 0.0 }
 0x21a   : > { %v4150_v32 = vpack.c.bf16 %v1169_v28, %v1159_v21 }
 0x21c   : > { %2030 = vrot.lane.b32.xlu1 %v4018_v29, %s5254_s14  ;;  %1207 = vrot.lane.b32.xlu0 %v4026_v46, %s5238_s8  ;;  %s5266_s8 = smov 103  }
 0x220   : > { %2121 = vrot.lane.b32.xlu1 %v4018_v29, %s5258_s23  ;;  %1301 = vrot.lane.b32.xlu0 %v4026_v46, %s5240_s21  ;;  %s5250_s21 = smov 101   ;;  %v1170_v29 = vmax.f32 %v1150_v26, 0.0 }
 0x222   : > { %v4152_v33 = vpack.c.bf16 %v1170_v29, %v1160_v27 }
 0x224   : > { %1254 = vrot.lane.b32.xlu1 %v4026_v46, %s5262_s15  ;;  %1405 = vrot.lane.b32.xlu0 %v4026_v46, %s5270_s18 }
 0x228   : > { %1348 = vrot.lane.b32.xlu1 %v4026_v46, %s5268_s11  ;;  %1499 = vrot.lane.b32.xlu0 %v4026_v46, %s5242_s16  ;;  %s5252_s16 = smov 50  }
 0x22c   : > { %1452 = vrot.lane.b32.xlu1 %v4026_v46, %s5266_s8  ;;  %1595 = vrot.lane.b32.xlu0 %v4026_v46, %s5244_s9  ;;  %s5272_s9 = smov 53  }
 0x230   : > { %1546 = vrot.lane.b32.xlu1 %v4026_v46, %s5250_s21  ;;  %1689 = vrot.lane.b32.xlu0 %v4026_v46, %s5246_s17  ;;  %s5260_s17 = smov 47   ;;  %s5256_s21 = smov 123  }
 0x234   : > { %1642 = vrot.lane.b32.xlu1 %v4026_v46, %s5248_s19  ;;  %1793 = vrot.lane.b32.xlu0 %v4026_v46, %s5264_s20  ;;  %s5343_s19 = smov 7  }
 0x238   : > { %1736 = vrot.lane.b32.xlu1 %v4026_v46, %s5274_s22  ;;  %1887 = vrot.lane.b32.xlu0 %v4026_v46, %s5252_s16  ;;  %s5344_s16 = smov 27  }
 0x23c   : > { %1840 = vrot.lane.b32.xlu1 %v4026_v46, %s5272_s9  ;;  %2032 = vrot.lane.b32.xlu0 %v4026_v46, %s5254_s14  ;;  %s5345_s14 = smov 25  }
 0x240   : > { %1934 = vrot.lane.b32.xlu1 %v4026_v46, %s5260_s17  ;;  %2077 = vrot.lane.b32.xlu0 %v4026_v46, %s5264_s20  ;;  %s5348_s17 = smov 81   ;;  %s5350_s20 = smov 75  }
 0x244   : > { %1985 = vrot.lane.b32.xlu1 %v4026_v46, %s5343_s19  ;;  %2180 = vrot.lane.b32.xlu0 %v4026_v46, %s5256_s21  ;;  %s5346_s21 = smov 101  }
 0x248   : > { %2123 = vrot.lane.b32.xlu1 %v4026_v46, %s5258_s23  ;;  %1209 = vrot.lane.b32.xlu0 %v4028_v51, %s5344_s16  ;;  %s5347_s23 = smov 102  }
 0x24c   : > { %2227 = vrot.lane.b32.xlu1 %v4026_v46, %s5274_s22  ;;  %1256 = vrot.lane.b32.xlu0 %v4028_v51, %s5262_s15  ;;  %s5349_s15 = smov 78  }
 0x250   : > { %1303 = vrot.lane.b32.xlu1 %v4028_v51, %s5345_s14  ;;  %1350 = vrot.lane.b32.xlu0 %v4028_v51, %s5268_s11  ;;  %s5352_s11 = smov 47  }
 0x254   : > { %1454 = vrot.lane.b32.xlu1 %v4028_v51, %s5266_s8  ;;  %1407 = vrot.lane.b32.xlu0 %v4028_v51, %s5270_s18  ;;  %s5351_s8 = smov 125   ;;  %s5353_s18 = smov 50  }
 0x258   : > { %1548 = vrot.lane.b32.xlu1 %v4028_v51, %s5346_s21  ;;  %1501 = vrot.lane.b32.xlu0 %v4028_v51, %s5347_s23 }
 0x25c   : > { %1597 = vrot.lane.b32.xlu1 %v4028_v51, %s5348_s17  ;;  %1644 = vrot.lane.b32.xlu0 %v4028_v51, %s5349_s15 }
 0x260   : > { %1691 = vrot.lane.b32.xlu1 %v4028_v51, %s5350_s20  ;;  %1738 = vrot.lane.b32.xlu0 %v4028_v51, %s5274_s22 }
 0x264   : > { %1842 = vrot.lane.b32.xlu1 %v4028_v51, %s5272_s9  ;;  %1795 = vrot.lane.b32.xlu0 %v4028_v51, %s5351_s8  ;;  %s5355_s9 = smov 123  }
 0x268   : > { %1936 = vrot.lane.b32.xlu1 %v4028_v51, %s5352_s11  ;;  %1889 = vrot.lane.b32.xlu0 %v4028_v51, %s5353_s18 }
 0x26c   : > { %2079 = vrot.lane.b32.xlu1 %v4028_v51, %s5351_s8  ;;  %2125 = vrot.lane.b32.xlu0 %v4028_v51, %s5354_s0 }
 0x270   : > { %2229 = vrot.lane.b32.xlu1 %v4028_v51, %s5274_s22  ;;  %2182 = vrot.lane.b32.xlu0 %v4028_v51, %s5355_s9  ;;  %s5356_s22 = smov 127  }
 0x274   : > { %2320 = vrot.lane.b32.xlu1 %v4028_v51, %s5276_s2  ;;  %2273 = vrot.lane.b32.xlu0 %v4028_v51, %s5278_s3  ;;  %s5357_s2 = smov 26   ;;  %s5358_s3 = smov 1  }
 0x276   : > { %v4146_v30 = vpop.permute.xlu1 %2028  ;;  %v4148_v31 = vpop.permute.xlu0 %1981 }
 0x278   : > { %1413 = vrot.lane.b32.xlu1 %v4034_v58, %s5356_s22  ;;  %1215 = vrot.lane.b32.xlu0 %v4034_v58, %s5344_s16 }
 0x27a   : > { %v4158_v34 = vpop.permute.xlu0 %1299  ;;  %v4160_v35 = vpop.permute.xlu1 %1205 }
 0x27c   : > { %1217 = vrot.lane.b32.xlu1 %v4036_v62, %s5344_s16  ;;  %1262 = vrot.lane.b32.xlu0 %v4034_v58, %s5357_s2 }
 0x27e   : > { %v4166_v36 = vpop.permute.xlu0 %1593  ;;  %v4168_v37 = vpop.permute.xlu1 %1252 }
 0x280   : > { %1264 = vrot.lane.b32.xlu1 %v4036_v62, %s5357_s2  ;;  %1309 = vrot.lane.b32.xlu0 %v4034_v58, %s5345_s14 }
 0x282   : > { %v4174_v38 = vpop.permute.xlu0 %1687  ;;  %v4176_v39 = vpop.permute.xlu1 %1346 }
 0x284   : > { %1311 = vrot.lane.b32.xlu1 %v4036_v62, %s5345_s14  ;;  %1356 = vrot.lane.b32.xlu0 %v4034_v58, %s5358_s3 }
 0x286   : > { %v4182_v40 = vpop.permute.xlu0 %1983  ;;  %v4184_v41 = vpop.permute.xlu1 %1640 }
 0x288   : > { %1358 = vrot.lane.b32.xlu1 %v4036_v62, %s5358_s3  ;;  %1456 = vrot.lane.b32.xlu0 %v4042_v4, %s5359_s10 }
 0x28a   : > { %v4190_v42 = vpop.permute.xlu0 %2075  ;;  %v4192_v43 = vpop.permute.xlu1 %1734 }
 0x28c   : > { %1415 = vrot.lane.b32.xlu0 %v4036_v62, %s5356_s22  ;;  %1409 = vrot.lane.b32.xlu1 %v4042_v4, %s5356_s22 }
 0x28e   : > { %v4198_v44 = vpop.permute.xlu1 %2030  ;;  %v1208_v45 = vpop.permute.xlu0 %1207 }
 0x28f   : > { %v1220_v21 = vsel %vm1219_vm3, %v4160_v35, %v1208_v45 }
 0x290   : > { %1462 = vrot.lane.b32.xlu0 %v4036_v62, %s5359_s10  ;;  %1460 = vrot.lane.b32.xlu1 %v4034_v58, %s5359_s10 }
 0x292   : > { %v4204_v47 = vpop.permute.xlu1 %2121  ;;  %v4206_v48 = vpop.permute.xlu0 %1301 }
 0x294   : > { %1509 = vrot.lane.b32.xlu0 %v4036_v62, %s5347_s23  ;;  %1503 = vrot.lane.b32.xlu1 %v4042_v4, %s5347_s23 }
 0x296   : > { %v1255_v49 = vpop.permute.xlu1 %1254  ;;  %v4212_v50 = vpop.permute.xlu0 %1405 }
 0x297   : > { %v1267_v29 = vsel %vm1266_vm4, %v4168_v37, %v1255_v49  ;;  %v1314_v37 = vsel %vm1313_vm5, %v4158_v34, %v4206_v48 }
 0x298   : > { %1550 = vrot.lane.b32.xlu0 %v4042_v4, %s5346_s21  ;;  %1507 = vrot.lane.b32.xlu1 %v4034_v58, %s5347_s23 }
 0x29a   : > { %v4218_v52 = vpop.permute.xlu1 %1348  ;;  %v4220_v53 = vpop.permute.xlu0 %1499 }
 0x29b   : > { %v1361_v34 = vsel %vm1360_vm6, %v4176_v39, %v4218_v52 }
 0x29c   : > { %1556 = vrot.lane.b32.xlu0 %v4036_v62, %s5346_s21  ;;  %1554 = vrot.lane.b32.xlu1 %v4034_v58, %s5346_s21 }
 0x29e   : > { %v4226_v54 = vpop.permute.xlu1 %1452  ;;  %v4228_v55 = vpop.permute.xlu0 %1595 }
 0x2a0   : > { %1603 = vrot.lane.b32.xlu0 %v4034_v58, %s5348_s17  ;;  %1605 = vrot.lane.b32.xlu1 %v4036_v62, %s5348_s17 }
 0x2a2   : > { %v4234_v56 = vpop.permute.xlu1 %1546  ;;  %v4236_v57 = vpop.permute.xlu0 %1689 }
 0x2a4   : > { %1650 = vrot.lane.b32.xlu0 %v4034_v58, %s5349_s15  ;;  %1652 = vrot.lane.b32.xlu1 %v4036_v62, %s5349_s15 }
 0x2a6   : > { %v4242_v59 = vpop.permute.xlu1 %1642  ;;  %v4244_v60 = vpop.permute.xlu0 %1793 }
 0x2a8   : > { %1697 = vrot.lane.b32.xlu0 %v4034_v58, %s5350_s20  ;;  %1699 = vrot.lane.b32.xlu1 %v4036_v62, %s5350_s20 }
 0x2aa   : > { %v4250_v61 = vpop.permute.xlu1 %1736  ;;  %v4252_v63 = vpop.permute.xlu0 %1887 }
 0x2ac   : > { %1744 = vrot.lane.b32.xlu0 %v4034_v58, %s5361_s30  ;;  %1801 = vrot.lane.b32.xlu1 %v4034_v58, %s5351_s8 }
 0x2ae   : > { %v4265_v2 = vpop.permute.xlu1 %1840  ;;  %v4267_v3 = vpop.permute.xlu0 %2032 }
 0x2af   : > { %5362 = vst [vmem:[#allocation23_spill] sm:$0xff] %v4267_v3 }
 0x2b0   : > { %1844 = vrot.lane.b32.xlu0 %v4042_v4, %s5363_s27  ;;  %1797 = vrot.lane.b32.xlu1 %v4042_v4, %s5351_s8 }
 0x2b2   : > { %v4273_v6 = vpop.permute.xlu1 %1934  ;;  %v4275_v9 = vpop.permute.xlu0 %2077 }
 0x2b4   : > { %1938 = vrot.lane.b32.xlu0 %v4042_v4, %s5352_s11  ;;  %1746 = vrot.lane.b32.xlu1 %v4036_v62, %s5361_s30 }
 0x2b6   : > { %v4281_v10 = vpop.permute.xlu1 %1985  ;;  %v4283_v11 = vpop.permute.xlu0 %2180 }
 0x2b8   : > { %2231 = vrot.lane.b32.xlu0 %v4042_v4, %s5361_s30  ;;  %1891 = vrot.lane.b32.xlu1 %v4042_v4, %s5353_s18 }
 0x2ba   : > { %v4289_v12 = vpop.permute.xlu1 %2123  ;;  %v4291_v13 = vpop.permute.xlu0 %1209 }
 0x2bb   : > { %v1221_v18 = vsel %vm1219_vm3, %v1208_v45, %v4291_v13 }
 0x2bc   : > { %2560 = vmatprep.subr.bf16.mxu0 %v1221_v18  ;;  %1211 = vrot.lane.b32.xlu0 %v4042_v4, %s5344_s16 }
 0x2bd   : > { %1848 = vrot.lane.b32.xlu1 %v4034_v58, %s5363_s27  ;;  %2561 = vmatpush1.bf16.msra.mxu0 %v1220_v21 }
 0x2be   : > { %v4301_v26 = vpop.permute.xlu1 %2227  ;;  %v4303_v27 = vpop.permute.xlu0 %1256 }
 0x2bf   : > { %v1268_v28 = vsel %vm1266_vm4, %v1255_v49, %v4303_v27 }
 0x2c0   : > { %2562 = vmatprep.subr.bf16.mxu0 %v1268_v28  ;;  %2275 = vrot.lane.b32.xlu0 %v4042_v4, %s5364_s25 }
 0x2c1   : > { %1895 = vrot.lane.b32.xlu1 %v4034_v58, %s5353_s18  ;;  %2563 = vmatpush1.bf16.msra.mxu0 %v1267_v29 }
 0x2c2   : > { %v4313_v35 = vpop.permute.xlu1 %1303  ;;  %v4315_v45 = vpop.permute.xlu0 %1350 }
 0x2c3   : > { %v1315_v18 = vsel %vm1313_vm5, %v4206_v48, %v4313_v35  ;;  %v1362_v49 = vsel %vm1360_vm6, %v4218_v52, %v4315_v45 }
 0x2c4   : > { %2564 = vmatprep.subr.bf16.mxu0 %v1315_v18  ;;  %1305 = vrot.lane.b32.xlu0 %v4042_v4, %s5345_s14 }
 0x2c5   : > { %2184 = vrot.lane.b32.xlu1 %v4042_v4, %s5355_s9  ;;  %2565 = vmatpush1.bf16.msra.mxu0 %v1314_v37 }
 0x2c6   : > { %v4330_v21 = vpop.permute.xlu1 %1454  ;;  %2566 = vmatprep.subr.bf16.mxu0 %v1362_v49  ;;  %v4332_v28 = vpop.permute.xlu0 %1407 }
 0x2c8   : > { %1352 = vrot.lane.b32.xlu0 %v4042_v4, %s5358_s3 }
 0x2c9   : > { %1258 = vrot.lane.b32.xlu1 %v4042_v4, %s5357_s2  ;;  %2567 = vmatpush1.bf16.msra.mxu0 %v1361_v34 }
 0x2ca   : > { %v4341_v48 = vpop.permute.xlu1 %1548  ;;  %2568 = vmatprep.subr.bf16.mxu0 %v4028_v51  ;;  %v4344_v29 = vpop.permute.xlu0 %1501 }
 0x2cc   : > { %1599 = vrot.lane.b32.xlu0 %v4042_v4, %s5348_s17 }
 0x2cd   : > { %2322 = vrot.lane.b32.xlu1 %v4042_v4, %s5365_s26  ;;  %2569 = vmatpush1.bf16.msra.mxu0 %v4026_v46 }
 0x2ce   : > { %v4351_v18 = vpop.permute.xlu1 %1597  ;;  %v4353_v39 = vpop.permute.xlu0 %1644 }
 0x2d0   : > { %1646 = vrot.lane.b32.xlu0 %v4042_v4, %s5349_s15 }
 0x2d1   : > { %1213 = vrot.lane.b32.xlu1 %v4044_v5, %s5344_s16 }
 0x2d2   : > { %v4359_v52 = vpop.permute.xlu1 %1691  ;;  %v4361_v37 = vpop.permute.xlu0 %1738 }
 0x2d4   : > { %1693 = vrot.lane.b32.xlu0 %v4042_v4, %s5350_s20 }
 0x2d5   : > { %2277 = vrot.lane.b32.xlu1 %v4044_v5, %s5364_s25 }
 0x2d6   : > { %v4367_v49 = vpop.permute.xlu1 %1842  ;;  %v4369_v34 = vpop.permute.xlu0 %1795 }
 0x2d8   : > { %1740 = vrot.lane.b32.xlu0 %v4042_v4, %s5361_s30 }
 0x2d9   : > { %1942 = vrot.lane.b32.xlu1 %v4034_v58, %s5352_s11 }
 0x2da   : > { %v4375_v25 = vpop.permute.xlu1 %1936  ;;  %v4377_v24 = vpop.permute.xlu0 %1889 }
 0x2dc   : > { %1260 = vrot.lane.b32.xlu0 %v4044_v5, %s5357_s2  ;;  %s5366_s2 = smov 2  }
 0x2dd   : > { %1989 = vrot.lane.b32.xlu1 %v4042_v4, %s5343_s19 }
 0x2de   : > { %v4383_v22 = vpop.permute.xlu1 %2079  ;;  %v4385_v19 = vpop.permute.xlu0 %2125 }
 0x2e0   : > { %2324 = vrot.lane.b32.xlu0 %v4044_v5, %s5365_s26 }
 0x2e1   : > { %1307 = vrot.lane.b32.xlu1 %v4044_v5, %s5345_s14 }
 0x2e2   : > { %v4391_v0 = vpop.permute.xlu1 %2229  ;;  %v4393_v16 = vpop.permute.xlu0 %2182 }
 0x2e4   : > { %1803 = vrot.lane.b32.xlu0 %v4036_v62, %s5351_s8 }
 0x2e5   : > { %1354 = vrot.lane.b32.xlu1 %v4044_v5, %s5358_s3 }
 0x2e6   : > { %v4399_v15 = vpop.permute.xlu1 %2320  ;;  %v4401_v23 = vpop.permute.xlu0 %2273 }
 0x2e8   : > { %1850 = vrot.lane.b32.xlu0 %v4036_v62, %s5363_s27 }
 0x2e9   : > { %2036 = vrot.lane.b32.xlu1 %v4042_v4, %s5366_s2 }
 0x2ea   : > { %v4407_v20 = vpop.permute.xlu1 %1413  ;;  %v4409_v17 = vpop.permute.xlu0 %1215 }
 0x2eb   : > { %5367 = vst [vmem:[#allocation24_spill] sm:$0xff] %v4407_v20  ;;  %5368 = vst [vmem:[#allocation25_spill] sm:$0xff] %v4409_v17 }
 0x2ec   : > { %1987 = vrot.lane.b32.xlu0 %v4028_v51, %s5343_s19 }
 0x2ed   : > { %1601 = vrot.lane.b32.xlu1 %v4044_v5, %s5348_s17 }
 0x2ee   : > { %v4415_v14 = vpop.permute.xlu1 %1217  ;;  %v4417_v8 = vpop.permute.xlu0 %1262 }
 0x2ef   : > { %5369 = vst [vmem:[#allocation26_spill] sm:$0xff] %v4415_v14  ;;  %5370 = vst [vmem:[#allocation27_spill] sm:$0xff] %v4417_v8 }
 0x2f0   : > { %1411 = vrot.lane.b32.xlu0 %v4044_v5, %s5356_s22 }
 0x2f1   : > { %1648 = vrot.lane.b32.xlu1 %v4044_v5, %s5349_s15 }
 0x2f2   : > { %v4423_v7 = vpop.permute.xlu1 %1264  ;;  %v4425_v20 = vpop.permute.xlu0 %1309 }
 0x2f3   : > { %5371 = vst [vmem:[#allocation28_spill] sm:$0xff] %v4423_v7  ;;  %5372 = vst [vmem:[#allocation29_spill] sm:$0xff] %v4425_v20 }
 0x2f4   : > { %1458 = vrot.lane.b32.xlu0 %v4044_v5, %s5359_s10 }
 0x2f5   : > { %1695 = vrot.lane.b32.xlu1 %v4044_v5, %s5350_s20  ;;  %s3573_s20 = smul.u32 96, %s3919_s29 }
 0x2f6   : > { %v4431_v1 = vpop.permute.xlu1 %1311  ;;  %v4433_v17 = vpop.permute.xlu0 %1356 }
 0x2f7   : > { %5373 = vst [vmem:[#allocation30_spill] sm:$0xff] %v4431_v1  ;;  %5374 = vst [vmem:[#allocation31_spill] sm:$0xff] %v4433_v17 }
 0x2f8   : > { %1505 = vrot.lane.b32.xlu0 %v4044_v5, %s5347_s23 }
 0x2f9   : > { %1742 = vrot.lane.b32.xlu1 %v4044_v5, %s5361_s30 }
 0x2fa   : > { %v4439_v8 = vpop.permute.xlu1 %1358  ;;  %v4441_v7 = vpop.permute.xlu0 %1456 }
 0x2fb   : > { %5375 = vst [vmem:[#allocation32_spill] sm:$0xff] %v4439_v8  ;;  %v1420_v8 = vsel %vm1419_vm7, %v4212_v50, %v4332_v28  ;;  %v1467_v50 = vsel %vm1466_vm8, %v4226_v54, %v4330_v21  ;;  %v1514_v54 = vsel %vm1513_vm9, %v4220_v53, %v4344_v29  ;;  %v1561_v53 = vsel %vm1560_vm10, %v4234_v56, %v4341_v48 }
 0x2fc   : > { %1552 = vrot.lane.b32.xlu0 %v4044_v5, %s5346_s21  ;;  %v1608_v56 = vsel %vm1607_vm11, %v4166_v36, %v4228_v55  ;;  %v1655_v36 = vsel %vm1654_vm12, %v4184_v41, %v4242_v59  ;;  %v1702_v41 = vsel %vm5311_vm13, %v4174_v38, %v4236_v57  ;;  %v1749_v38 = vsel %vm1748_vm14, %v4192_v43, %v4250_v61 }
 0x2fd   : > { %1417 = vrot.lane.b32.xlu1 %v4150_v32, %s5356_s22 }
 0x2fe   : > { %v4447_v20 = vpop.permute.xlu0 %1415  ;;  %v4449_v17 = vpop.permute.xlu1 %1409 }
 0x2ff   : > { %5376 = vst [vmem:[#allocation33_spill] sm:$0xff] %v4447_v20  ;;  %v1421_v1 = vsel %vm1419_vm7, %v4332_v28, %v4449_v17  ;;  %v1468_v20 = vsel %vm1466_vm8, %v4330_v21, %v4441_v7 }
 0x300   : > { %2570 = vmatprep.subr.bf16.mxu0 %v1421_v1  ;;  %1897 = vrot.lane.b32.xlu0 %v4036_v62, %s5353_s18 }
 0x301   : > { %1464 = vrot.lane.b32.xlu1 %v4150_v32, %s5359_s10  ;;  %2571 = vmatpush1.bf16.msra.mxu0 %v1420_v8  ;;  %s3777_s10 = smov [#allocation8]  }
 0x302   : > { %v4464_v14 = vpop.permute.xlu0 %1462  ;;  %2572 = vmatprep.subr.bf16.mxu0 %v1468_v20  ;;  %v4466_v1 = vpop.permute.xlu1 %1460  ;;  %s3688_s14 = sshll.u32 %s3777_s10, 4  ;;  %s3689_s14 = int_to_ptr.vmem [resolvable:$false] %s3688_s14 }
 0x303   : > { %s3690_s16 = scalar_lea.vmem %s3689_s14, 3072 }
 0x304   : > { %2034 = vrot.lane.b32.xlu0 %v4028_v51, %s5366_s2 }
 0x305   : > { %1511 = vrot.lane.b32.xlu1 %v4150_v32, %s5347_s23  ;;  %2573 = vmatpush1.bf16.msra.mxu0 %v1467_v50  ;;  %s3574_s23 = smul.u32 1536, %s3841_s28  ;;  %s3422_s28 = scalar_lea.sflag [#allocation7], %s3919_s29 }
 0x306   : > { %v4475_v8 = vpop.permute.xlu0 %1509  ;;  %v4477_v28 = vpop.permute.xlu1 %1503 }
 0x307   : > { %v1515_v20 = vsel %vm1513_vm9, %v4344_v29, %v4477_v28  ;;  %v1609_v29 = vsel %vm1607_vm11, %v4228_v55, %v4351_v18  ;;  %v1703_v55 = vsel %vm5311_vm13, %v4236_v57, %v4359_v52  ;;  %vm1948_vm13 = vcmask 384000  }
 0x308   : > { %2574 = vmatprep.subr.bf16.mxu0 %v1515_v20  ;;  %1944 = vrot.lane.b32.xlu0 %v4036_v62, %s5352_s11 }
 0x309   : > { %1558 = vrot.lane.b32.xlu1 %v4150_v32, %s5346_s21  ;;  %2575 = vmatpush1.bf16.msra.mxu0 %v1514_v54 }
 0x30a   : > { %v4489_v21 = vpop.permute.xlu0 %1550  ;;  %v4491_v50 = vpop.permute.xlu1 %1507 }
 0x30b   : > { %v1562_v20 = vsel %vm1560_vm10, %v4341_v48, %v4489_v21  ;;  %v1656_v48 = vsel %vm1654_vm12, %v4242_v59, %v4353_v39  ;;  %v1750_v59 = vsel %vm1748_vm14, %v4250_v61, %v4361_v37 }
 0x30c   : > { %2576 = vmatprep.subr.bf16.mxu0 %v1562_v20  ;;  %2081 = vrot.lane.b32.xlu0 %v4042_v4, %s5351_s8 }
 0x30d   : > { %2083 = vrot.lane.b32.xlu1 %v4044_v5, %s5351_s8  ;;  %2577 = vmatpush1.bf16.msra.mxu0 %v1561_v53 }
 0x30e   : > { %v4506_v54 = vpop.permute.xlu0 %1556  ;;  %2578 = vmatprep.subr.bf16.mxu0 %v1609_v29  ;;  %v4508_v20 = vpop.permute.xlu1 %1554 }
 0x310   : > { %1799 = vrot.lane.b32.xlu0 %v4044_v5, %s5351_s8 }
 0x311   : > { %1993 = vrot.lane.b32.xlu1 %v4034_v58, %s5343_s19  ;;  %2579 = vmatpush1.bf16.msra.mxu0 %v1608_v56 }
 0x312   : > { %v4520_v53 = vpop.permute.xlu0 %1603  ;;  %2580 = vmatprep.subr.bf16.mxu0 %v1656_v48  ;;  %v4522_v29 = vpop.permute.xlu1 %1605 }
 0x314   : > { %1846 = vrot.lane.b32.xlu0 %v4044_v5, %s5363_s27 }
 0x315   : > { %2129 = vrot.lane.b32.xlu1 %v4044_v5, %s5354_s0  ;;  %2581 = vmatpush1.bf16.msra.mxu0 %v1655_v36 }
 0x316   : > { %v4534_v56 = vpop.permute.xlu0 %1650  ;;  %2582 = vmatprep.subr.bf16.mxu0 %v1703_v55  ;;  %v4536_v48 = vpop.permute.xlu1 %1652 }
 0x318   : > { %1893 = vrot.lane.b32.xlu0 %v4044_v5, %s5353_s18 }
 0x319   : > { %2040 = vrot.lane.b32.xlu1 %v4034_v58, %s5366_s2  ;;  %2583 = vmatpush1.bf16.msra.mxu0 %v1702_v41 }
 0x31a   : > { %v4548_v36 = vpop.permute.xlu0 %1697  ;;  %2584 = vmatprep.subr.bf16.mxu0 %v1750_v59  ;;  %v4550_v55 = vpop.permute.xlu1 %1699 }
 0x31b   : > { %5377 = vst [vmem:[#allocation34_spill] sm:$0xff] %v4548_v36 }
 0x31c   : > { %1940 = vrot.lane.b32.xlu0 %v4044_v5, %s5352_s11 }
 0x31d   : > { %2087 = vrot.lane.b32.xlu1 %v4036_v62, %s5351_s8  ;;  %2585 = vmatpush1.bf16.msra.mxu0 %v1749_v38  ;;  %v1808_v38 = vsel %vm1807_vm15, %v4244_v60, %v4369_v34  ;;  %v1855_v60 = vsel %vm5310_vm1, %v4265_v2, %v4367_v49 }
 0x31e   : > { %v4559_v57 = vpop.permute.xlu0 %1744  ;;  %2586 = vmatprep.subr.bf16.mxu0 %v4028_v51  ;;  %v4562_v41 = vpop.permute.xlu1 %1801 }
 0x31f   : > { %5378 = vst [vmem:[#allocation35_spill] sm:$0xff] %v4559_v57 }
 0x320   : > { %1991 = vrot.lane.b32.xlu0 %v4044_v5, %s5343_s19 }
 0x321   : > { %1805 = vrot.lane.b32.xlu1 %v4150_v32, %s5351_s8  ;;  %2587 = vmatpush1.bf16.msra.mxu0 %v4026_v46 }
 0x322   : > { %v4569_v59 = vpop.permute.xlu0 %1844  ;;  %v4571_v43 = vpop.permute.xlu1 %1797 }
 0x323   : > { %5379 = vst [vmem:[#allocation36_spill] sm:$0xff] %v4569_v59  ;;  %v1809_v61 = vsel %vm1807_vm15, %v4369_v34, %v4571_v43  ;;  %v1856_v57 = vsel %vm5310_vm1, %v4367_v49, %v4569_v59  ;;  %v4600_v34 = vld [vmem:[%s5231_s4] ss:$16 sps:$4 sm:$0xff]   ;;  %v4609_v59 = vld [vmem:[%s5231_s4 + $0xc] ss:$16 sps:$4 sm:$0xff]   ;;  %vm2556_vm1 = vcmask 523264   ;;  %v1902_v49 = vsel %vm5313_vm0, %v4252_v63, %v4377_v24 }
 0x324   : > { %2588 = vmatprep.subr.bf16.mxu0 %v1809_v61  ;;  %2127 = vrot.lane.b32.xlu0 %v4042_v4, %s5354_s0 }
 0x325   : > { %1852 = vrot.lane.b32.xlu1 %v4150_v32, %s5363_s27  ;;  %2589 = vmatpush1.bf16.msra.mxu0 %v1808_v38 }
 0x326   : > { %v4586_v36 = vpop.permute.xlu0 %1938  ;;  %2590 = vmatprep.subr.bf16.mxu0 %v1856_v57  ;;  %v4588_v61 = vpop.permute.xlu1 %1746 }
 0x328   : > { %2038 = vrot.lane.b32.xlu0 %v4044_v5, %s5366_s2  ;;  %s5177_s2 = scalar_lea.hbm %s5234_s7, %s3574_s23 }
 0x329   : > { %1899 = vrot.lane.b32.xlu1 %v4150_v32, %s5353_s18  ;;  %2591 = vmatpush1.bf16.msra.mxu0 %v1855_v60 }
 0x32a   : > { %v4602_v38 = vpop.permute.xlu0 %2231  ;;  %v4604_v57 = vpop.permute.xlu1 %1891 }
 0x32b   : > { %5380 = vst [vmem:[#allocation37_spill] sm:$0xff] %v4602_v38  ;;  %5381 = vst [vmem:[#allocation38_spill] sm:$0xff] %v4604_v57  ;;  %v1903_v2 = vsel %vm5313_vm0, %v4377_v24, %v4604_v57  ;;  %v1950_v57 = vsel %vm1948_vm13, %v4375_v25, %v4586_v36  ;;  %v1949_v24 = vsel %vm1948_vm13, %v4273_v6, %v4375_v25  ;;  %vm5317_vm0 = vcmask 56320  }
 0x32c   : > { %2603 = vmatprep.subr.bf16.mxu0 %v1903_v2  ;;  %2085 = vrot.lane.b32.xlu0 %v4034_v58, %s5351_s8  ;;  %v1996_v25 = vsel %vm5317_vm0, %v4148_v31, %v4182_v40  ;;  %v2043_v31 = vsel %vm5315_vm2, %v4146_v30, %v4198_v44 }
 0x32d   : > { %1946 = vrot.lane.b32.xlu1 %v4150_v32, %s5352_s11  ;;  %2593 = vmatmul.mubr.bf16.vlgmr.msra.gmra.mrb[4].mxu0 %v4600_v34 }
 0x32e   : > { %2604 = vmatpush1.bf16.msra.mxu0 %v1902_v49  ;;  %v1212_v60 = vpop.permute.xlu0 %1211  ;;  %3542 = vmatprep.mubr.msk.bf16.mxu0 %vm2556_vm1, %v4609_v59 }
 0x32f   : > { %2605 = vmatprep.subr.bf16.mxu0 %v1950_v57  ;;  %v4627_v2 = vpop.permute.xlu1 %1848  ;;  %v1997_v57 = vsel %vm5317_vm0, %v4182_v40, %v4281_v10  ;;  %vm2287_vm0 = vcmask 1031168  }
 0x330   : > { %2186 = vrot.lane.b32.xlu0 %v4044_v5, %s5355_s9 }
 0x331   : > { %2188 = vrot.lane.b32.xlu1 %v4034_v58, %s5355_s9 }
 0x332   : > { %2606 = vmatpush1.bf16.msra.mxu0 %v1949_v24  ;;  %v4636_v63 = vpop.permute.xlu0 %2275  ;;  %v2044_v24 = vsel %vm5315_vm2, %v4198_v44, %v4267_v3  ;;  %v2089_v3 = vsel %vm1807_vm15, %v4190_v42, %v4275_v9  ;;  %vm5316_vm2 = vcmask 39936  }
 0x333   : > { %2607 = vmatprep.subr.bf16.mxu0 %v1997_v57  ;;  %v4641_v49 = vpop.permute.xlu1 %1895  ;;  %v2137_v44 = vsel %vm5316_vm2, %v4289_v12, %v4385_v19  ;;  %v2136_v42 = vsel %vm5316_vm2, %v4204_v47, %v4289_v12  ;;  %vm5319_vm2 = vcmask 1006592  }
 0x334   : > { %2131 = vrot.lane.b32.xlu0 %v4034_v58, %s5354_s0 }
 0x335   : > { %2133 = vrot.lane.b32.xlu1 %v4036_v62, %s5354_s0 }
 0x336   : > { %2608 = vmatpush1.bf16.msra.mxu0 %v1996_v25  ;;  %v4650_v6 = vpop.permute.xlu0 %1305  ;;  %v2090_v25 = vsel %vm1807_vm15, %v4275_v9, %v4383_v22 }
 0x337   : > { %2609 = vmatprep.subr.bf16.mxu0 %v2044_v24  ;;  %v4655_v57 = vpop.permute.xlu1 %2184 }
 0x338   : > { %2233 = vrot.lane.b32.xlu0 %v4044_v5, %s5361_s30  ;;  %v2196_v12 = vsel %vm5319_vm2, %v4393_v16, %v4655_v57 }
 0x339   : > { %2235 = vrot.lane.b32.xlu1 %v4034_v58, %s5361_s30 }
 0x33a   : > { %2610 = vmatpush1.bf16.msra.mxu0 %v2043_v31  ;;  %v4664_v40 = vpop.permute.xlu0 %1352 }
 0x33b   : > { %2611 = vmatprep.subr.bf16.mxu0 %v2090_v25  ;;  %v1259_v24 = vpop.permute.xlu1 %1258 }
 0x33c   : > { %2279 = vrot.lane.b32.xlu0 %v4034_v58, %s5364_s25 }
 0x33d   : > { %2281 = vrot.lane.b32.xlu1 %v4036_v62, %s5364_s25 }
 0x33e   : > { %2612 = vmatpush1.bf16.msra.mxu0 %v2089_v3  ;;  %v4676_v30 = vpop.permute.xlu0 %1599 }
 0x33f   : > { %2613 = vmatprep.subr.bf16.mxu0 %v2137_v44  ;;  %v2323_v31 = vpop.permute.xlu1 %2322  ;;  %v1222_v44 = vsel %vm1219_vm3, %v4291_v13, %v1212_v60  ;;  %v2195_v13 = vsel %vm5319_vm2, %v4283_v11, %v4393_v16  ;;  %v2241_v16 = vsel %vm1748_vm14, %v4301_v26, %v4391_v0  ;;  %vm2334_vm2 = vcmask 990208  }
 0x340   : > { %2190 = vrot.lane.b32.xlu0 %v4036_v62, %s5355_s9 }
 0x341   : > { %2328 = vrot.lane.b32.xlu1 %v4036_v62, %s5365_s26 }
 0x342   : > { %2614 = vmatpush1.bf16.msra.mxu0 %v2136_v42  ;;  %v4688_v3 = vpop.permute.xlu0 %1646 }
 0x343   : > { %2615 = vmatprep.subr.bf16.mxu0 %v4028_v51  ;;  %v4691_v9 = vpop.permute.xlu1 %1213 }
 0x344   : > { %2326 = vrot.lane.b32.xlu0 %v4034_v58, %s5365_s26  ;;  %v1223_v25 = vsel %vm1219_vm3, %v1212_v60, %v4691_v9 }
 0x345   : > { %2646 = vmatprep.subr.bf16.mxu1 %v1223_v25  ;;  %2192 = vrot.lane.b32.xlu1 %v4150_v32, %s5355_s9  ;;  %v2242_v25 = vsel %vm1748_vm14, %v4391_v0, %v4602_v38  ;;  %v1269_v38 = vsel %vm1266_vm4, %v4303_v27, %v1259_v24  ;;  %v2288_v0 = vsel %vm2287_vm0, %v4401_v23, %v4636_v63 }
 0x346   : > { %2616 = vmatpush1.bf16.msra.mxu0 %v4026_v46  ;;  %2647 = vmatpush1.bf16.msra.mxu1 %v1222_v44  ;;  %v4702_v47 = vpop.permute.xlu0 %1693  ;;  %v1316_v23 = vsel %vm1313_vm5, %v4313_v35, %v4650_v6 }
 0x347   : > { %2617 = vmatprep.subr.bf16.mxu0 %v2196_v12  ;;  %v4707_v42 = vpop.permute.xlu1 %2277 }
 0x348   : > { %2237 = vrot.lane.b32.xlu0 %v4036_v62, %s5361_s30  ;;  %v2289_v12 = vsel %vm2287_vm0, %v4636_v63, %v4707_v42 }
 0x349   : > { %2239 = vrot.lane.b32.xlu1 %v4150_v32, %s5361_s30 }
 0x34a   : > { %2618 = vmatpush1.bf16.msra.mxu0 %v2195_v13  ;;  %v4716_v60 = vpop.permute.xlu0 %1740 }
 0x34b   : > { %2619 = vmatprep.subr.bf16.mxu0 %v2242_v25  ;;  %v4721_v44 = vpop.permute.xlu1 %1942 }
 0x34c   : > { %2283 = vrot.lane.b32.xlu0 %v4150_v32, %s5364_s25 }
 0x34d   : > { %2285 = vrot.lane.b32.xlu1 %v4152_v33, %s5364_s25 }
 0x34e   : > { %2620 = vmatpush1.bf16.msra.mxu0 %v2241_v16  ;;  %v1261_v11 = vpop.permute.xlu0 %1260 }
 0x34f   : > { %2621 = vmatprep.subr.bf16.mxu0 %v2289_v12  ;;  %v4733_v13 = vpop.permute.xlu1 %1989  ;;  %v1270_v25 = vsel %vm1266_vm4, %v1259_v24, %v1261_v11  ;;  %v1363_v12 = vsel %vm1360_vm6, %v4315_v45, %v4664_v40 }
 0x350   : > { %2648 = vmatprep.subr.bf16.mxu1 %v1270_v25  ;;  %2330 = vrot.lane.b32.xlu0 %v4150_v32, %s5365_s26 }
 0x351   : > { %2332 = vrot.lane.b32.xlu1 %v4152_v33, %s5365_s26  ;;  %2649 = vmatpush1.bf16.msra.mxu1 %v1269_v38  ;;  %v2335_v33 = vsel %vm2334_vm2, %v4399_v15, %v2323_v31  ;;  %v4767_v15 = vld [vmem:[%s5231_s4 + $0x8] ss:$16 sps:$4 sm:$0xff]  }
 0x352   : > { %2622 = vmatpush1.bf16.msra.mxu0 %v2288_v0  ;;  %v4745_v26 = vpop.permute.xlu0 %2324  ;;  %v5385_v0 = vld [vmem:[#allocation27_spill] sm:$0xff] }
 0x353   : > { %v1308_v16 = vpop.permute.xlu1 %1307  ;;  %v2336_v27 = vsel %vm2334_vm2, %v2323_v31, %v4745_v26 }
 0x354   : > { %2623 = vmatprep.subr.bf16.mxu0 %v2336_v27  ;;  %v1317_v32 = vsel %vm1313_vm5, %v4650_v6, %v1308_v16  ;;  %v5383_v6 = vld [vmem:[#allocation25_spill] sm:$0xff] }
 0x355   : > { %2650 = vmatprep.subr.bf16.mxu1 %v1317_v32  ;;  %v1224_v45 = vsel %vm1219_vm3, %v4691_v9, %v5383_v6 }
 0x356   : > { %2624 = vmatpush1.bf16.msra.mxu0 %v2335_v33  ;;  %2651 = vmatpush1.bf16.msra.mxu1 %v1316_v23  ;;  %v4756_v38 = vpop.permute.xlu0 %1803  ;;  %v5386_v23 = vld [vmem:[#allocation22_spill] sm:$0xff]  ;;  %v1271_v33 = vsel %vm1266_vm4, %v1261_v11, %v5385_v0 }
 0x357   : > { %2625 = vmatprep.subr.bf16.mxu0 %v4028_v51  ;;  %v1355_v63 = vpop.permute.xlu1 %1354  ;;  %v5382_v51 = vld [vmem:[#allocation26_spill] sm:$0xff] }
 0x358   : > { %v1364_v24 = vsel %vm1360_vm6, %v4664_v40, %v1355_v63  ;;  %v1225_v31 = vsel %vm1219_vm3, %v5383_v6, %v5382_v51  ;;  %v5384_v40 = vld [vmem:[#allocation28_spill] sm:$0xff]  ;;  %vm5393_vm3 = vcmask 613376  }
 0x359   : > { %2652 = vmatprep.subr.bf16.mxu1 %v1364_v24  ;;  %v1272_v27 = vsel %vm1266_vm4, %v5385_v0, %v5384_v40  ;;  %v5387_v24 = vld [vmem:[#allocation30_spill] sm:$0xff]  ;;  %v5390_v0 = vld [vmem:[#allocation32_spill] sm:$0xff]  ;;  %vm5394_vm4 = vmmov %vm5393_vm3 }
 0x35a   : > { %2626 = vmatpush1.bf16.msra.mxu0 %v4026_v46  ;;  %2653 = vmatpush1.bf16.msra.mxu1 %v1363_v12  ;;  %v4770_v35 = vpop.permute.xlu0 %1850  ;;  %v5388_v12 = vld [vmem:[#allocation29_spill] sm:$0xff] }
 0x35b   : > { %2732 = vmatprep.subr.bf16.mxu0 %v1225_v31  ;;  %v4775_v25 = vpop.permute.xlu1 %2036  ;;  %2654 = vmatprep.subr.bf16.mxu1 %v4044_v5  ;;  %v1319_v51 = vsel %vm1313_vm5, %v5388_v12, %v5387_v24 }
 0x35d   : > { %2636 = vmatmul.mubr.bf16.vlgmr.msra.gmra.mrb[4].mxu0 %v4767_v15 }
 0x35e   : > { %2655 = vmatpush1.bf16.msra.mxu1 %v4042_v4  ;;  %2733 = vmatpush1.bf16.msra.mxu0 %v1224_v45  ;;  %v4783_v46 = vpop.permute.xlu0 %1987  ;;  %v5389_v45 = vld [vmem:[#allocation24_spill] sm:$0xff] }
 0x35f   : > { %2734 = vmatprep.subr.bf16.mxu0 %v1272_v27  ;;  %v4788_v32 = vpop.permute.xlu1 %1601  ;;  %2764 = vmatprep.mubr.bf16.mxu0 %v5386_v23  ;;  %v1318_v27 = vsel %vm1313_vm5, %v1308_v16, %v5388_v12  ;;  %v5391_v23 = vld [vmem:[#allocation31_spill] sm:$0xff]  ;;  %vm5396_vm5 = vmmov %vm5393_vm3 }
 0x360   : > { %v1365_v16 = vsel %vm1360_vm6, %v1355_v63, %v5391_v23 }
 0x362   : > { %2735 = vmatpush1.bf16.msra.mxu0 %v1271_v33  ;;  %v1412_v9 = vpop.permute.xlu0 %1411  ;;  %v1366_v33 = vsel %vm1360_vm6, %v5391_v23, %v5390_v0 }
 0x363   : > { %v1422_v6 = vsel %vm1419_vm7, %v4449_v17, %v1412_v9  ;;  %2736 = vmatprep.subr.bf16.mxu0 %v1319_v51  ;;  %v4798_v31 = vpop.permute.xlu1 %1648  ;;  %v1423_v40 = vsel %vm1419_vm7, %v1412_v9, %v5389_v45 }
 0x364   : > { %2656 = vmatprep.subr.bf16.mxu1 %v1423_v40 }
 0x365   : > { %2657 = vmatpush1.bf16.msra.mxu1 %v1422_v6 }
 0x366   : > { %2737 = vmatpush1.bf16.msra.mxu0 %v1318_v27  ;;  %v1459_v11 = vpop.permute.xlu0 %1458 }
 0x367   : > { %v1469_v17 = vsel %vm1466_vm8, %v4441_v7, %v1459_v11  ;;  %2738 = vmatprep.subr.bf16.mxu0 %v1366_v33  ;;  %v4809_v24 = vpop.permute.xlu1 %1695  ;;  %v1470_v9 = vsel %vm1466_vm8, %v1459_v11, %v4466_v1  ;;  %v1611_v33 = vsel %vm1607_vm11, %v4676_v30, %v4788_v32 }
 0x368   : > { %2658 = vmatprep.subr.bf16.mxu1 %v1470_v9  ;;  %v1610_v9 = vsel %vm1607_vm11, %v4351_v18, %v4676_v30  ;;  %v1657_v18 = vsel %vm1654_vm12, %v4353_v39, %v4688_v3  ;;  %v1704_v39 = vsel %vm5394_vm4, %v4359_v52, %v4702_v47  ;;  %v1613_v52 = vsel %vm1607_vm11, %v4520_v53, %v4522_v29 }
 0x369   : > { %2659 = vmatpush1.bf16.msra.mxu1 %v1469_v17  ;;  %v1660_v29 = vsel %vm1654_vm12, %v4534_v56, %v4536_v48 }
 0x36a   : > { %2739 = vmatpush1.bf16.msra.mxu0 %v1365_v16  ;;  %v1506_v12 = vpop.permute.xlu0 %1505 }
 0x36b   : > { %v1516_v51 = vsel %vm1513_vm9, %v4477_v28, %v1506_v12  ;;  %2740 = vmatprep.subr.bf16.mxu0 %v4036_v62  ;;  %v4818_v6 = vpop.permute.xlu1 %1742  ;;  %v1517_v7 = vsel %vm1513_vm9, %v1506_v12, %v4491_v50  ;;  %v5392_v28 = vld [vmem:[#allocation33_spill] sm:$0xff]  ;;  %v1658_v12 = vsel %vm1654_vm12, %v4688_v3, %v4798_v31 }
 0x36c   : > { %2660 = vmatprep.subr.bf16.mxu1 %v1517_v7  ;;  %v1424_v23 = vsel %vm1419_vm7, %v5389_v45, %v5392_v28  ;;  %v1471_v45 = vsel %vm1466_vm8, %v4466_v1, %v4464_v14  ;;  %v1705_v1 = vsel %vm5393_vm3, %v4702_v47, %v4809_v24 }
 0x36d   : > { %2661 = vmatpush1.bf16.msra.mxu1 %v1516_v51 }
 0x36e   : > { %2741 = vmatpush1.bf16.msra.mxu0 %v4034_v58  ;;  %v1553_v40 = vpop.permute.xlu0 %1552 }
 0x36f   : > { %v1563_v63 = vsel %vm1560_vm10, %v4489_v21, %v1553_v40  ;;  %v1418_v27 = vpop.permute.xlu1 %1417  ;;  %v1564_v11 = vsel %vm1560_vm10, %v1553_v40, %v4508_v20 }
 0x370   : > { %2662 = vmatprep.subr.bf16.mxu1 %v1564_v11  ;;  %v1425_v0 = vsel %vm1419_vm7, %v5392_v28, %v1418_v27  ;;  %v1751_v11 = vsel %vm1748_vm14, %v4361_v37, %v4716_v60  ;;  %v1659_v37 = vsel %vm1654_vm12, %v4798_v31, %v4534_v56 }
 0x371   : > { %2742 = vmatprep.subr.bf16.mxu0 %v1425_v0  ;;  %2663 = vmatpush1.bf16.msra.mxu1 %v1563_v63 }
 0x372   : > { %2743 = vmatpush1.bf16.msra.mxu0 %v1424_v23  ;;  %v4835_v21 = vpop.permute.xlu0 %1897  ;;  %2664 = vmatprep.subr.bf16.mxu1 %v1611_v33 }
 0x373   : > { %v1465_v17 = vpop.permute.xlu1 %1464 }
 0x374   : > { %v1472_v16 = vsel %vm1466_vm8, %v4464_v14, %v1465_v17  ;;  %v1518_v14 = vsel %vm1513_vm9, %v4491_v50, %v4475_v8  ;;  %v1752_v50 = vsel %vm1748_vm14, %v4716_v60, %v4818_v6  ;;  %vm5397_vm8 = vmmov %vm5393_vm3  ;;  %v5399_v17 = vld [vmem:[#allocation35_spill] sm:$0xff]  ;;  %vm5405_vm3 = vcmask 56320  }
 0x375   : > { %2744 = vmatprep.subr.bf16.mxu0 %v1472_v16  ;;  %2665 = vmatpush1.bf16.msra.mxu1 %v1610_v9  ;;  %v5400_v16 = vld [vmem:[#allocation36_spill] sm:$0xff]  ;;  %vm5406_vm4 = vmmov %vm5405_vm3 }
 0x376   : > { %2745 = vmatpush1.bf16.msra.mxu0 %v1471_v45  ;;  %v4848_v51 = vpop.permute.xlu0 %2034  ;;  %2666 = vmatprep.subr.bf16.mxu1 %v1658_v12 }
 0x377   : > { %v1512_v7 = vpop.permute.xlu1 %1511 }
 0x378   : > { %v1519_v30 = vsel %vm1513_vm9, %v4475_v8, %v1512_v7  ;;  %v1565_v8 = vsel %vm1560_vm10, %v4508_v20, %v4506_v54  ;;  %vm5398_vm9 = vcmask 433152   ;;  %v5403_v7 = vld [vmem:[#allocation38_spill] sm:$0xff] }
 0x379   : > { %2746 = vmatprep.subr.bf16.mxu0 %v1519_v30  ;;  %2667 = vmatpush1.bf16.msra.mxu1 %v1657_v18 }
 0x37a   : > { %2747 = vmatpush1.bf16.msra.mxu0 %v1518_v14  ;;  %v4861_v40 = vpop.permute.xlu0 %1944  ;;  %2668 = vmatprep.subr.bf16.mxu1 %v1705_v1 }
 0x37b   : > { %v1559_v63 = vpop.permute.xlu1 %1558 }
 0x37c   : > { %v1566_v3 = vsel %vm1560_vm10, %v4506_v54, %v1559_v63  ;;  %v1612_v54 = vsel %vm1607_vm11, %v4788_v32, %v4520_v53  ;;  %v5395_v32 = vld [vmem:[#allocation34_spill] sm:$0xff]  ;;  %vm5401_vm10 = vmmov %vm5398_vm9  ;;  %vm5402_vm11 = vcmask 408576  }
 0x37d   : > { %2748 = vmatprep.subr.bf16.mxu0 %v1566_v3  ;;  %2669 = vmatpush1.bf16.msra.mxu1 %v1704_v39  ;;  %v1707_v0 = vsel %vm5396_vm5, %v5395_v32, %v4550_v55  ;;  %v1706_v56 = vsel %vm5397_vm8, %v4809_v24, %v5395_v32  ;;  %v1754_v55 = vsel %vm1748_vm14, %v5399_v17, %v4588_v61  ;;  %vm5404_vm12 = vmmov %vm5402_vm11 }
 0x37e   : > { %2749 = vmatpush1.bf16.msra.mxu0 %v1565_v8  ;;  %v4874_v27 = vpop.permute.xlu0 %2081  ;;  %2670 = vmatprep.subr.bf16.mxu1 %v1752_v50  ;;  %v1753_v24 = vsel %vm1748_vm14, %v4818_v6, %v5399_v17  ;;  %v1812_v39 = vsel %vm1807_vm15, %v4562_v41, %v4756_v38  ;;  %v1999_v3 = vsel %vm5405_vm3, %v4783_v46, %v4733_v13  ;;  %vm5407_vm5 = vmmov %vm5398_vm9  ;;  %vm5413_vm3 = vcmask 39936  }
 0x37f   : > { %2750 = vmatprep.subr.bf16.mxu0 %v1613_v52  ;;  %v4879_v47 = vpop.permute.xlu1 %2083  ;;  %vm5408_vm8 = vmmov %vm5407_vm5 }
 0x381   : > { %2671 = vmatpush1.bf16.msra.mxu1 %v1751_v11 }
 0x382   : > { %2751 = vmatpush1.bf16.msra.mxu0 %v1612_v54  ;;  %v1800_v20 = vpop.permute.xlu0 %1799  ;;  %2672 = vmatprep.subr.bf16.mxu1 %v4044_v5 }
 0x383   : > { %2752 = vmatprep.subr.bf16.mxu0 %v1660_v29  ;;  %v4891_v28 = vpop.permute.xlu1 %1993  ;;  %v1811_v53 = vsel %vm1807_vm15, %v1800_v20, %v4562_v41  ;;  %v1810_v23 = vsel %vm1807_vm15, %v4571_v43, %v1800_v20  ;;  %v1859_v41 = vsel %vm5408_vm8, %v4627_v2, %v4770_v35  ;;  %v5410_v20 = vld [vmem:[#allocation23_spill] sm:$0xff]  ;;  %vm5418_vm8 = vcmask 1006592  }
 0x385   : > { %2673 = vmatpush1.bf16.msra.mxu1 %v4042_v4 }
 0x386   : > { %2753 = vmatpush1.bf16.msra.mxu0 %v1659_v37  ;;  %v1847_v60 = vpop.permute.xlu0 %1846  ;;  %2674 = vmatprep.subr.bf16.mxu1 %v1811_v53 }
 0x387   : > { %2754 = vmatprep.subr.bf16.mxu0 %v1707_v0  ;;  %v4902_v48 = vpop.permute.xlu1 %2129  ;;  %v1858_v31 = vsel %vm5398_vm9, %v1847_v60, %v4627_v2  ;;  %v1857_v43 = vsel %vm5401_vm10, %v5400_v16, %v1847_v60  ;;  %vm5409_vm9 = vcmask 15360   ;;  %v2092_v2 = vsel %vm1807_vm15, %v4874_v27, %v4879_v47 }
 0x388   : > { %vm5411_vm10 = vmmov %vm5409_vm9 }
 0x389   : > { %2675 = vmatpush1.bf16.msra.mxu1 %v1810_v23 }
 0x38a   : > { %2755 = vmatpush1.bf16.msra.mxu0 %v1706_v56  ;;  %v1894_v33 = vpop.permute.xlu0 %1893  ;;  %2676 = vmatprep.subr.bf16.mxu1 %v1858_v31 }
 0x38b   : > { %2756 = vmatprep.subr.bf16.mxu0 %v1754_v55  ;;  %v4914_v9 = vpop.permute.xlu1 %2040  ;;  %v1905_v45 = vsel %vm5402_vm11, %v1894_v33, %v4641_v49  ;;  %v1904_v18 = vsel %vm5404_vm12, %v5403_v7, %v1894_v33  ;;  %vm5412_vm12 = vmmov %vm5402_vm11 }
 0x38d   : > { %2677 = vmatpush1.bf16.msra.mxu1 %v1857_v43 }
 0x38e   : > { %2757 = vmatpush1.bf16.msra.mxu0 %v1753_v24  ;;  %v1941_v12 = vpop.permute.xlu0 %1940  ;;  %2689 = vmatprep.subr.bf16.mxu1 %v1905_v45 }
 0x38f   : > { %2758 = vmatprep.subr.bf16.mxu0 %v4036_v62  ;;  %v4924_v61 = vpop.permute.xlu1 %2087  ;;  %v1952_v6 = vsel %vm1948_vm13, %v1941_v12, %v4721_v44  ;;  %v1951_v1 = vsel %vm1948_vm13, %v4586_v36, %v1941_v12  ;;  %v1998_v36 = vsel %vm5406_vm4, %v4281_v10, %v4783_v46  ;;  %v2045_v10 = vsel %vm5411_vm10, %v5410_v20, %v4848_v51  ;;  %vm5419_vm10 = vmmov %vm5418_vm8 }
 0x390   : > { %2679 = vmatmul.mubr.bf16.vlgmr.msra.gmra.mrb[28].mxu1 %v4600_v34 }
 0x391   : > { %2690 = vmatpush1.bf16.msra.mxu1 %v1904_v18  ;;  %3543 = vmatprep.mubr.msk.bf16.mxu1 %vm2556_vm1, %v4609_v59 }
 0x392   : > { %2759 = vmatpush1.bf16.msra.mxu0 %v4034_v58  ;;  %v1992_v30 = vpop.permute.xlu0 %1991  ;;  %2691 = vmatprep.subr.bf16.mxu1 %v1952_v6 }
 0x393   : > { %v1806_v14 = vpop.permute.xlu1 %1805 }
 0x394   : > { %v1813_v63 = vsel %vm1807_vm15, %v4756_v38, %v1806_v14  ;;  %v2046_v38 = vsel %vm5409_vm9, %v4848_v51, %v4775_v25  ;;  %v2091_v51 = vsel %vm1807_vm15, %v4383_v22, %v4874_v27 }
 0x395   : > { %2760 = vmatprep.subr.bf16.mxu0 %v1813_v63  ;;  %2692 = vmatpush1.bf16.msra.mxu1 %v1951_v1  ;;  %v5425_v63 = vld [vmem:[#allocation16_spill] sm:$0xff] }
 0x396   : > { %2761 = vmatpush1.bf16.msra.mxu0 %v1812_v39  ;;  %v2128_v8 = vpop.permute.xlu0 %2127  ;;  %2693 = vmatprep.subr.bf16.mxu1 %v1999_v3  ;;  %v5426_v39 = vmax.f32 %v5425_v63, 0.0 }
 0x397   : > { %v1853_v50 = vpop.permute.xlu1 %1852 }
 0x398   : > { %v1860_v52 = vsel %vm5407_vm5, %v4770_v35, %v1853_v50  ;;  %v1906_v35 = vsel %vm5412_vm12, %v4641_v49, %v4835_v21  ;;  %v2139_v49 = vsel %vm5413_vm3, %v2128_v8, %v4902_v48  ;;  %vm5422_vm12 = vmmov %vm5413_vm3  ;;  %v5427_v50 = vld [vmem:[#allocation17_spill] sm:$0xff] }
 0x399   : > { %2762 = vmatprep.subr.bf16.mxu0 %v1860_v52  ;;  %2694 = vmatpush1.bf16.msra.mxu1 %v1998_v36  ;;  %v5428_v36 = vmax.f32 %v5427_v50, 0.0 }
 0x39a   : > { %2763 = vmatpush1.bf16.msra.mxu0 %v1859_v41  ;;  %v2039_v11 = vpop.permute.xlu0 %2038  ;;  %2695 = vmatprep.subr.bf16.mxu1 %v2046_v38  ;;  %v5429_v41 = vmov 0.0  }
 0x39b   : > { %v1900_v54 = vpop.permute.xlu1 %1899 }
 0x39c   : > { %v1907_v46 = vsel %vm5402_vm11, %v4835_v21, %v1900_v54  ;;  %vm5420_vm11 = vmmov %vm5413_vm3 }
 0x39d   : > { %2775 = vmatprep.subr.bf16.mxu0 %v1907_v46  ;;  %2696 = vmatpush1.bf16.msra.mxu1 %v2045_v10  ;;  %v3032_v10 = vld [vmem:[%s5233_s6] sm:$0xff]  ;;  %v5433_v46 = vld [vmem:[#allocation19_spill] sm:$0xff] }
 0x39e   : > { %2765 = vmatmul.mubr.bf16.vlgmr.msra.gmra.mrb[8].mxu0 %v4600_v34  ;;  %v2086_v29 = vpop.permute.xlu0 %2085  ;;  %2697 = vmatprep.subr.bf16.mxu1 %v2092_v2  ;;  %v1953_v34 = vsel %vm1948_vm13, %v4721_v44, %v4861_v40  ;;  %v5434_v2 = vmax.f32 %v5433_v46, 0.0 }
 0x39f   : > { %2776 = vmatpush1.bf16.msra.mxu0 %v1906_v35  ;;  %v1947_v37 = vpop.permute.xlu1 %1946  ;;  %3544 = vmatprep.mubr.msk.bf16.mxu0 %vm2556_vm1, %v4609_v59  ;;  %vm5414_vm1 = vmmov %vm5406_vm4  ;;  %v2093_v33 = vsel %vm1807_vm15, %v4879_v47, %v2086_v29  ;;  %v5435_v35 = vld [vmem:[#allocation20_spill] sm:$0xff] }
 0x3a0   : > { %v1954_v53 = vsel %vm1948_vm13, %v4861_v40, %v1947_v37  ;;  %v2001_v59 = vsel %vm5414_vm1, %v1992_v30, %v4891_v28  ;;  %vm5415_vm4 = vmmov %vm5413_vm3  ;;  %v2844_v37 = vlaneseq }
 0x3a1   : > { %2777 = vmatprep.subr.bf16.mxu0 %v1954_v53  ;;  %2698 = vmatpush1.bf16.msra.mxu1 %v2091_v51  ;;  %v2138_v22 = vsel %vm5415_vm4, %v4385_v19, %v2128_v8  ;;  %vm5416_vm5 = vmmov %vm5414_vm1  ;;  %v2047_v19 = vsel %vm5409_vm9, %v4775_v25, %v2039_v11 }
 0x3a2   : > { %v2187_v21 = vpop.permute.xlu0 %2186  ;;  %2699 = vmatprep.subr.bf16.mxu1 %v2139_v49  ;;  %v2000_v27 = vsel %vm5416_vm5, %v4733_v13, %v1992_v30  ;;  %vm5417_vm13 = vmmov %vm5409_vm9  ;;  %v2094_v13 = vsel %vm1807_vm15, %v2086_v29, %v4924_v61  ;;  %v5436_v29 = vmax.f32 %v5435_v35, 0.0 }
 0x3a3   : > { %2778 = vmatpush1.bf16.msra.mxu0 %v1953_v34  ;;  %v2189_v60 = vpop.permute.xlu1 %2188  ;;  %v2048_v44 = vsel %vm5417_vm13, %v2039_v11, %v4914_v9  ;;  %v2197_v56 = vsel %vm5419_vm10, %v4655_v57, %v2187_v21  ;;  %v5421_v9 = vld [vmem:[#allocation37_spill] sm:$0xff]  ;;  %vm5423_vm15 = vmmov %vm5418_vm8  ;;  %v5057_v34 = vld [vmem:[%s5228_s1] sm:$0x3f]  ;;  %vm3276_vm13 = vcmask 392192  }
 0x3a4   : > { %2779 = vmatprep.subr.bf16.mxu0 %v2001_v59  ;;  %v2198_v28 = vsel %vm5418_vm8, %v2187_v21, %v2189_v60  ;;  %vm5424_vm3 = vmmov %vm5418_vm8 }
 0x3a5   : > { %2700 = vmatpush1.bf16.msra.mxu1 %v2138_v22 }
 0x3a6   : > { %v2132_v32 = vpop.permute.xlu0 %2131  ;;  %2701 = vmatprep.subr.bf16.mxu1 %v4044_v5 }
 0x3a7   : > { %2780 = vmatpush1.bf16.msra.mxu0 %v2000_v27  ;;  %v2134_v40 = vpop.permute.xlu1 %2133  ;;  %v2140_v43 = vsel %vm5422_vm12, %v4902_v48, %v2132_v32 }
 0x3a8   : > { %2781 = vmatprep.subr.bf16.mxu0 %v2048_v44  ;;  %v2141_v25 = vsel %vm5420_vm11, %v2132_v32, %v2134_v40 }
 0x3a9   : > { %2702 = vmatpush1.bf16.msra.mxu1 %v4042_v4 }
 0x3aa   : > { %v2234_v0 = vpop.permute.xlu0 %2233  ;;  %2703 = vmatprep.subr.bf16.mxu1 %v2198_v28 }
 0x3ab   : > { %2782 = vmatpush1.bf16.msra.mxu0 %v2047_v19  ;;  %v2236_v23 = vpop.permute.xlu1 %2235  ;;  %v2243_v16 = vsel %vm1748_vm14, %v5421_v9, %v2234_v0  ;;  %v3776_v9 = vmov 0  }
 0x3ac   : > { %2783 = vmatprep.subr.bf16.mxu0 %v2094_v13  ;;  %v2244_v31 = vsel %vm1748_vm14, %v2234_v0, %v2236_v23 }
 0x3ad   : > { %2704 = vmatpush1.bf16.msra.mxu1 %v2197_v56 }
 0x3ae   : > { %v2280_v17 = vpop.permute.xlu0 %2279  ;;  %2705 = vmatprep.subr.bf16.mxu1 %v2244_v31 }
 0x3af   : > { %2784 = vmatpush1.bf16.msra.mxu0 %v2093_v33  ;;  %v2282_v55 = vpop.permute.xlu1 %2281  ;;  %v2290_v45 = vsel %vm2287_vm0, %v4707_v42, %v2280_v17 }
 0x3b0   : > { %2785 = vmatprep.subr.bf16.mxu0 %v2141_v25  ;;  %v2291_v57 = vsel %vm2287_vm0, %v2280_v17, %v2282_v55 }
 0x3b1   : > { %2706 = vmatpush1.bf16.msra.mxu1 %v2243_v16 }
 0x3b2   : > { %v2191_v24 = vpop.permute.xlu0 %2190  ;;  %2707 = vmatprep.subr.bf16.mxu1 %v2291_v57 }
 0x3b3   : > { %2786 = vmatpush1.bf16.msra.mxu0 %v2140_v43  ;;  %v2329_v47 = vpop.permute.xlu1 %2328  ;;  %v2199_v6 = vsel %vm5424_vm3, %v2189_v60, %v2191_v24 }
 0x3b4   : > { %2787 = vmatprep.subr.bf16.mxu0 %v4036_v62 }
 0x3b5   : > { %2708 = vmatpush1.bf16.msra.mxu1 %v2290_v45 }
 0x3b6   : > { %v2327_v12 = vpop.permute.xlu0 %2326 }
 0x3b7   : > { %2788 = vmatpush1.bf16.msra.mxu0 %v4034_v58  ;;  %v2337_v61 = vsel %vm2334_vm2, %v4745_v26, %v2327_v12  ;;  %v2193_v7 = vpop.permute.xlu1 %2192  ;;  %v2338_v18 = vsel %vm2334_vm2, %v2327_v12, %v2329_v47 }
 0x3b8   : > { %2709 = vmatprep.subr.bf16.mxu1 %v2338_v18  ;;  %v2200_v48 = vsel %vm5423_vm15, %v2191_v24, %v2193_v7 }
 0x3b9   : > { %2789 = vmatprep.subr.bf16.mxu0 %v2200_v48  ;;  %2710 = vmatpush1.bf16.msra.mxu1 %v2337_v61 }
 0x3ba   : > { %v2238_v42 = vpop.permute.xlu0 %2237  ;;  %2711 = vmatprep.subr.bf16.mxu1 %v4044_v5 }
 0x3bb   : > { %2790 = vmatpush1.bf16.msra.mxu0 %v2199_v6  ;;  %v2240_v30 = vpop.permute.xlu1 %2239  ;;  %v2245_v14 = vsel %vm1748_vm14, %v2236_v23, %v2238_v42 }
 0x3bc   : > { %v2246_v1 = vsel %vm1748_vm14, %v2238_v42, %v2240_v30 }
 0x3bd   : > { %2791 = vmatprep.subr.bf16.mxu0 %v2246_v1  ;;  %2712 = vmatpush1.bf16.msra.mxu1 %v4042_v4  ;;  %v5430_v4 = vld [vmem:[#allocation18_spill] sm:$0xff] }
 0x3be   : > { %v2284_v26 = vpop.permute.xlu0 %2283  ;;  %3040 = vmatprep.subr.mxu1 %v5426_v39  ;;  %v5431_v38 = vmax.f32 %v5430_v4, 0.0 }
 0x3bf   : > { %2792 = vmatpush1.bf16.msra.mxu0 %v2245_v14  ;;  %v2286_v3 = vpop.permute.xlu1 %2285  ;;  %v2292_v8 = vsel %vm2287_vm0, %v2282_v55, %v2284_v26 }
 0x3c0   : > { %2722 = vmatmul.mubr.bf16.vlgmr.msra.gmra.mrb[28].mxu1 %v4767_v15  ;;  %v2293_v5 = vsel %vm2287_vm0, %v2284_v26, %v2286_v3  ;;  %vm5432_vm0 = vcmask 64512  }
 0x3c1   : > { %2793 = vmatprep.subr.bf16.mxu0 %v2293_v5  ;;  %3041 = vmatpush1.msra.mxu1 %v5428_v36  ;;  %vm5438_vm14 = vmmov %vm5432_vm0 }
 0x3c2   : > { %v2331_v52 = vpop.permute.xlu0 %2330  ;;  %3104 = vmatprep.mubr.f32.mxu1 %v5429_v41  ;;  %3117 = vmatprep.subr.mxu1 %v5431_v38  ;;  %vm5441_vm1 = vmmov %vm5432_vm0 }
 0x3c3   : > { %2794 = vmatpush1.bf16.msra.mxu0 %v2292_v8  ;;  %v2333_v11 = vpop.permute.xlu1 %2332  ;;  %v2339_v54 = vsel %vm2334_vm2, %v2329_v47, %v2331_v52  ;;  %vm5442_vm4 = vmmov %vm5432_vm0 }
 0x3c4   : > { %v2340_v20 = vsel %vm2334_vm2, %v2331_v52, %v2333_v11  ;;  %vm5437_vm2 = vmmov %vm5432_vm0 }
 0x3c5   : > { %2795 = vmatprep.subr.bf16.mxu0 %v2340_v20  ;;  %vm5443_vm5 = vmmov %vm5432_vm0 }
 0x3c7   : > { %2796 = vmatpush1.bf16.msra.mxu0 %v2339_v54 }
 0x3c8   : > { %2797 = vmatprep.subr.bf16.mxu0 %v4036_v62  ;;  %3545 = vmatmul.mubr.msk.f32.vlgmr.msra.gmra.mrb[26].mxu1 %vm5432_vm0, %v3032_v10  ;;  %v5047_v62 = vshrl.u32 %v2844_v37, 7 }
 0x3c9   : > { %3110 = vmatprep.mubr.f32.mxu1 %v5429_v41  ;;  %3118 = vmatpush1.msra.mxu1 %v5434_v2 }
 0x3ca   : > { %3194 = vmatprep.subr.mxu1 %v5436_v29  ;;  %v2846_v53 = vsub.s32 0, %v5047_v62  ;;  %v2850_v21 = vsub.s32 1, %v5047_v62  ;;  %v2854_v57 = vsub.s32 2, %v5047_v62  ;;  %v2858_v24 = vsub.s32 3, %v5047_v62 }
 0x3cb   : > { %2798 = vmatpush1.bf16.msra.mxu0 %v4034_v58  ;;  %v3033_v58 = vld [vmem:[%s5233_s6 + $0x8] sm:$0xff]  ;;  %v2862_v36 = vsub.s32 4, %v5047_v62 }
 0x3cc   : > { %3546 = vmatmul.mubr.msk.f32.gmra.mrb[32].mxu1 %vm5437_vm2, %v3033_v58  ;;  %v2847_v44 = vrot.slane %v5057_v34, %v2846_v53  ;;  %v2851_v0 = vrot.slane %v5057_v34, %v2850_v21  ;;  %v2855_v18 = vrot.slane %v5057_v34, %v2854_v57  ;;  %v2859_v30 = vrot.slane %v5057_v34, %v2858_v24 }
 0x3cd   : > { %3181 = vmatprep.mubr.f32.mxu1 %v5429_v41 }
 0x3ce   : > { %2808 = vmatmul.mubr.bf16.vlgmr.msra.gmra.mrb[8].mxu0 %v4767_v15  ;;  %v5439_v15 = vld [vmem:[#allocation21_spill] sm:$0xff] }
 0x3cf   : > { %v5440_v51 = vmax.f32 %v5439_v15, 0.0 }
 0x3d0   : > { %3547 = vmatmul.mubr.msk.f32.vlgmr.msra.gmra.mrb[34].mxu1 %vm5438_vm14, %v3032_v10 }
 0x3d1   : > { %3187 = vmatprep.mubr.f32.mxu1 %v5429_v41  ;;  %3195 = vmatpush1.msra.mxu1 %v5440_v51 }
 0x3d4   : > { %3548 = vmatmul.mubr.msk.f32.gmra.mrb[36].mxu1 %vm5441_vm1, %v3033_v58 }
 0x3d5   : > { %3258 = vmatprep.mubr.f32.mxu1 %v5429_v41 }
 0x3d8   : > { %3549 = vmatmul.mubr.msk.f32.vlgmr.msra.gmra.mrb[38].mxu1 %vm5442_vm4, %v3032_v10  ;;  %v2863_v10 = vrot.slane %v5057_v34, %v2862_v36 }
 0x3d9   : > { %3264 = vmatprep.mubr.f32.mxu1 %v5429_v41  ;;  %v2866_v41 = vsub.s32 5, %v5047_v62 }
 0x3db   : > { %v2867_v29 = vrot.slane %v5057_v34, %v2866_v41 }
 0x3dc   : > { %3550 = vmatmul.mubr.msk.f32.gmra.mrb[40].mxu1 %vm5443_vm5, %v3033_v58 }
 0x3dd   : > { %3312 = vmatprep.mubr.bf16.mxu1 %v3776_v9 }
 0x430   : > { %v2637_v49 = vpop.f32.mrb[4].mxu0 }
 0x431   : > { %v2818_v59 = vmul.f32 0.999995, %v2637_v49  ;;  %v2639_v60 = vpop.f32.mrb[5].mxu0 }
 0x432   : > { %v2819_v22 = vmul.f32 0.999995, %v2639_v60  ;;  %v2641_v27 = vpop.f32.mrb[6].mxu0 }
 0x433   : > { %v2830_v32 = vmax.f32 %v2818_v59, 0.0  ;;  %v2824_v40 = vmul.f32 0.999995, %v2641_v27  ;;  %v2643_v28 = vpop.f32.mrb[7].mxu0 }
 0x434   : > { %v2831_v19 = vmax.f32 %v2819_v22, 0.0  ;;  %v2825_v13 = vmul.f32 0.999995, %v2643_v28 }
 0x435   : > { %v2836_v23 = vmax.f32 %v2824_v40, 0.0  ;;  %v2874_v31 = vmul.f32 %v2847_v44, %v2830_v32 }
 0x436   : > { %v2837_v56 = vmax.f32 %v2825_v13, 0.0  ;;  %v2875_v17 = vmul.f32 %v2851_v0, %v2831_v19 }
 0x437   : > { %v2880_v33 = vmul.f32 %v2847_v44, %v2836_v23 }
 0x438   : > { %v2881_v25 = vmul.f32 %v2851_v0, %v2837_v56 }
 0x439   : > { %v5067_v55 = vpack.c.bf16 %v2880_v33, %v2874_v31 }
 0x43a   : > { %v5070_v16 = vpack.c.bf16 %v2881_v25, %v2875_v17 }
 0x43b   : > { %2924 = vrot.lane.b32.xlu0 %v5067_v55, %s5358_s3 }
 0x43c   : > { %2926 = vrot.lane.b32.xlu1 %v5070_v16, %s5358_s3 }
 0x43f   : > { %2922 = vrot.lane.b32.xlu0 %v3776_v9, %s5358_s3 }
 0x440   : > { %2980 = vrot.lane.b32.xlu1 %v5067_v55, %s5356_s22 }
 0x444   : > { %2982 = vrot.lane.b32.xlu1 %v5070_v16, %s5356_s22 }
 0x493   : > { %v2723_v43 = vpop.f32.mrb[28].mxu1 }
 0x494   : > { %v2820_v47 = vmul.f32 0.999995, %v2723_v43  ;;  %v2725_v45 = vpop.f32.mrb[29].mxu1 }
 0x495   : > { %v2821_v12 = vmul.f32 0.999995, %v2725_v45  ;;  %v2727_v61 = vpop.f32.mrb[30].mxu1 }
 0x496   : > { %v2832_v7 = vmax.f32 %v2820_v47, 0.0  ;;  %v2826_v48 = vmul.f32 0.999995, %v2727_v61  ;;  %v2729_v6 = vpop.f32.mrb[31].mxu1  ;;  %v3653_v47 = vld [vmem:[%s5232_s5] sm:$0xff]  }
 0x497   : > { %v2833_v42 = vmax.f32 %v2821_v12, 0.0  ;;  %v2827_v14 = vmul.f32 0.999995, %v2729_v6 }
 0x498   : > { %v2838_v1 = vmax.f32 %v2826_v48, 0.0  ;;  %v2876_v63 = vmul.f32 %v2855_v18, %v2832_v7 }
 0x499   : > { %v2839_v26 = vmax.f32 %v2827_v14, 0.0  ;;  %v2877_v3 = vmul.f32 %v2859_v30, %v2833_v42 }
 0x49a   : > { %v2882_v39 = vmul.f32 %v2855_v18, %v2838_v1 }
 0x49b   : > { %v2883_v8 = vmul.f32 %v2859_v30, %v2839_v26  ;;  %v3106_v44 = vpop.f32.mrb[26].mxu1 }
 0x49c   : > { %v5086_v5 = vpack.c.bf16 %v2882_v39, %v2876_v63  ;;  %v3108_v40 = vpop.f32.mrb[27].mxu1 }
 0x49d   : > { %v5088_v50 = vpack.c.bf16 %v2883_v8, %v2877_v3 }
 0x49e   : > { %2984 = vrot.lane.b32.xlu0 %v5086_v5, %s5356_s22 }
 0x49f   : > { %2930 = vrot.lane.b32.xlu1 %v5088_v50, %s5358_s3  ;;  %v3112_v28 = vpop.f32.mrb[32].mxu1 }
 0x4a0   : > { %v3114_v19 = vpop.f32.mrb[33].mxu1 }
 0x4a1   : > { %v2809_v52 = vpop.f32.mrb[8].mxu0 }
 0x4a2   : > { %v2822_v4 = vmul.f32 0.999995, %v2809_v52  ;;  %v2811_v38 = vpop.f32.mrb[9].mxu0  ;;  %2928 = vrot.lane.b32.xlu0 %v5086_v5, %s5358_s3 }
 0x4a3   : > { %v2823_v11 = vmul.f32 0.999995, %v2811_v38  ;;  %v2813_v54 = vpop.f32.mrb[10].mxu0  ;;  %v5116_v0 = vpop.f32.mrb[34].mxu1 }
 0x4a4   : > { %v2834_v20 = vmax.f32 %v2822_v4, 0.0  ;;  %v2828_v46 = vmul.f32 0.999995, %v2813_v54  ;;  %v2815_v2 = vpop.f32.mrb[11].mxu0  ;;  %v5118_v13 = vpop.f32.mrb[35].mxu1 }
 0x4a5   : > { %v2835_v35 = vmax.f32 %v2823_v11, 0.0  ;;  %v2829_v37 = vmul.f32 0.999995, %v2815_v2 }
 0x4a6   : > { %v2840_v58 = vmax.f32 %v2828_v46, 0.0  ;;  %2986 = vrot.lane.b32.xlu0 %v5088_v50, %s5356_s22  ;;  %v2878_v15 = vmul.f32 %v2863_v10, %v2834_v20 }
 0x4a7   : > { %v2841_v62 = vmax.f32 %v2829_v37, 0.0  ;;  %v2879_v53 = vmul.f32 %v2867_v29, %v2835_v35  ;;  %v5120_v23 = vpop.f32.mrb[36].mxu1 }
 0x4a8   : > { %v2884_v51 = vmul.f32 %v2863_v10, %v2840_v58  ;;  %v5122_v56 = vpop.f32.mrb[37].mxu1 }
 0x4a9   : > { %v2885_v49 = vmul.f32 %v2867_v29, %v2841_v62 }
 0x4aa   : > { %v5102_v21 = vpack.c.bf16 %v2884_v51, %v2878_v15 }
 0x4ab   : > { %v2901_v59 = vpack.c.bf16 %v2885_v49, %v2879_v53  ;;  %v5124_v31 = vpop.f32.mrb[38].mxu1 }
 0x4ac   : > { %2932 = vrot.lane.b32.xlu0 %v5102_v21, %s5358_s3  ;;  %2988 = vrot.lane.b32.xlu1 %v5102_v21, %s5356_s22  ;;  %v5126_v33 = vpop.f32.mrb[39].mxu1 }
 0x4ad   : > { %v2925_v34 = vpop.permute.xlu0 %2924 }
 0x4ae   : > { %v2927_v60 = vpop.permute.xlu1 %2926 }
 0x4af   : > { %v2937_v22 = vsel %vm1360_vm6, %v2925_v34, %v2927_v60  ;;  %v5128_v25 = vpop.f32.mrb[40].mxu1 }
 0x4b0   : > { %2990 = vrot.lane.b32.xlu0 %v2901_v59, %s5356_s22  ;;  %2934 = vrot.lane.b32.xlu1 %v2901_v59, %s5358_s3 }
 0x4b1   : > { %3280 = vmatprep.subr.bf16.mxu1 %v2937_v22  ;;  %v2923_v27 = vpop.permute.xlu0 %2922 }
 0x4b2   : > { %v2936_v32 = vsel %vm1360_vm6, %v2923_v27, %v2925_v34  ;;  %v2981_v17 = vpop.permute.xlu1 %2980 }
 0x4b3   : > { %3281 = vmatpush1.bf16.msra.mxu1 %v2936_v32 }
 0x4b4   : > { %2992 = vrot.lane.b32.xlu1 %v3776_v9, %s5356_s22  ;;  %3282 = vmatprep.subr.bf16.mxu1 %v5070_v16  ;;  %s5154_s22 = scalar_lea.vmem [#allocation8], %s3573_s20 }
 0x4b5   : > { %s3435_s18 = sshll.u32 %s5154_s22, 4  ;;  %s5179_s18 = int_to_ptr.vmem [resolvable:$true] %s3435_s18 }
 0x4b6   : > { %v2983_v16 = vpop.permute.xlu1 %2982  ;;  %s3684_s27 = scalar_lea.vmem %s5179_s18, 1536  ;;  %p3691_p5 = scmp.lt.s32.totalorder %s5179_s18, %s3689_s14 }
 0x4b7   : > { %3283 = vmatpush1.bf16.msra.mxu1 %v5067_v55  ;;  %v5130_v55 = vpop.f32.mrb[41].mxu1  ;;  %v2994_v24 = vsel %vm1419_vm7, %v2981_v17, %v2983_v16  ;;  %p3685_p6 = scmp.ne.s32.totalorder %s5179_s18, %s3684_s27  ;;  %p3692_p10 = scmp.lt.s32.totalorder %s3690_s16, %s3684_s27 }
 0x4b9   : > { %p3686_p12 = pnand %p3685_p6, %p5444_p11  ;;  %p3693_p2 = por %p3692_p10, %p3691_p5 }
 0x4bb   : > { %p3687_p13 = pneg %p3686_p12 }
 0x4bd   : > { %p3694_p4 = pnand %p3693_p2, %p3687_p13 }
 0x510   : > { %v2985_v57 = vpop.permute.xlu0 %2984 }
 0x511   : > { %v2995_v43 = vsel %vm1419_vm7, %v2983_v16, %v2985_v57  ;;  %v2931_v45 = vpop.permute.xlu1 %2930 }
 0x512   : > { %3284 = vmatprep.subr.bf16.mxu1 %v2995_v43 }
 0x513   : > { %3285 = vmatpush1.bf16.msra.mxu1 %v2994_v24 }
 0x514   : > { %v2929_v12 = vpop.permute.xlu0 %2928 }
 0x515   : > { %v2938_v61 = vsel %vm1360_vm6, %v2927_v60, %v2929_v12  ;;  %v2939_v7 = vsel %vm1360_vm6, %v2929_v12, %v2931_v45 }
 0x516   : > { %3552 = vmatmul.mubr.msk.bf16.vlgmr.msra.gmra.mrb[44].mxu1 %vm3276_vm13, %v3653_v47  ;;  %3323 = vmatprep.subr.bf16.mxu1 %v2939_v7 }
 0x517   : > { %3324 = vmatpush1.bf16.msra.mxu1 %v2938_v61  ;;  %3355 = vmatprep.mubr.bf16.mxu1 %v3776_v9 }
 0x518   : > { %3325 = vmatprep.subr.bf16.mxu1 %v5088_v50  ;;  %v2987_v18 = vpop.permute.xlu0 %2986 }
 0x519   : > { %v2996_v42 = vsel %vm1419_vm7, %v2985_v57, %v2987_v18 }
 0x51b   : > { %3326 = vmatpush1.bf16.msra.mxu1 %v5086_v5 }
 0x51e   : > { %v2989_v48 = vpop.permute.xlu1 %2988  ;;  %v2933_v30 = vpop.permute.xlu0 %2932 }
 0x51f   : > { %v2997_v6 = vsel %vm1419_vm7, %v2987_v18, %v2989_v48  ;;  %v2940_v26 = vsel %vm1360_vm6, %v2931_v45, %v2933_v30 }
 0x520   : > { %3327 = vmatprep.subr.bf16.mxu1 %v2997_v6 }
 0x521   : > { %3328 = vmatpush1.bf16.msra.mxu1 %v2996_v42 }
 0x522   : > { %v2935_v14 = vpop.permute.xlu1 %2934  ;;  %v2991_v39 = vpop.permute.xlu0 %2990 }
 0x523   : > { %v2941_v1 = vsel %vm1360_vm6, %v2933_v30, %v2935_v14  ;;  %v2998_v8 = vsel %vm1419_vm7, %v2989_v48, %v2991_v39 }
 0x524   : > { %3553 = vmatmul.mubr.msk.bf16.vlgmr.msra.gmra.mrb[48].mxu1 %vm3276_vm13, %v3653_v47  ;;  %3366 = vmatprep.subr.bf16.mxu1 %v2941_v1 }
 0x525   : > { %3367 = vmatpush1.bf16.msra.mxu1 %v2940_v26  ;;  %3398 = vmatprep.mubr.bf16.mxu1 %v3776_v9 }
 0x526   : > { %3368 = vmatprep.subr.bf16.mxu1 %v2901_v59  ;;  %v2993_v63 = vpop.permute.xlu1 %2992 }
 0x527   : > { %v2999_v3 = vsel %vm1419_vm7, %v2991_v39, %v2993_v63 }
 0x529   : > { %3369 = vmatpush1.bf16.msra.mxu1 %v5102_v21 }
 0x52a   : > { %3370 = vmatprep.subr.bf16.mxu1 %v2999_v3 }
 0x52d   : > { %3371 = vmatpush1.bf16.msra.mxu1 %v2998_v8 }
 0x530   : > { %3554 = vmatmul.mubr.msk.bf16.vlgmr.msra.gmra.mrb[52].mxu1 %vm3276_vm13, %v3653_v47 }
 0x5e9   : > { %v3314_v5 = vpop.f32.mrb[44].mxu1 }
 0x5ea   : > { %v3315_v50 = vadd.f32 %v3314_v5, %v3106_v44  ;;  %v3316_v36 = vpop.f32.mrb[45].mxu1 }
 0x5eb   : > { %v3317_v52 = vadd.f32 %v3316_v36, %v3108_v40  ;;  %v3318_v41 = vpop.f32.mrb[46].mxu1 }
 0x5ec   : > { %3409 = vst [vmem:[%s5154_s22] sm:$0xff] %v3315_v50  ;;  %v3319_v9 = vadd.f32 %v3318_v41, %v3112_v28  ;;  %v3320_v4 = vpop.f32.mrb[47].mxu1 }
 0x5ed   : > { %3410 = vst [vmem:[%s5154_s22 + $0x8] sm:$0xff] %v3317_v52  ;;  %v3321_v38 = vadd.f32 %v3320_v4, %v3114_v19 }
 0x5ee   : > { %3415 = vst [vmem:[%s5154_s22 + $0x30] sm:$0xff] %v3319_v9 }
 0x5ef   : > { %3416 = vst [vmem:[%s5154_s22 + $0x38] sm:$0xff] %v3321_v38 }
 0x5f7   : > { %v3357_v11 = vpop.f32.mrb[48].mxu1 }
 0x5f8   : > { %v3358_v54 = vadd.f32 %v3357_v11, %v5116_v0  ;;  %v3359_v20 = vpop.f32.mrb[49].mxu1 }
 0x5f9   : > { %v3360_v10 = vadd.f32 %v3359_v20, %v5118_v13  ;;  %v3361_v46 = vpop.f32.mrb[50].mxu1 }
 0x5fa   : > { %3411 = vst [vmem:[%s5154_s22 + $0x10] sm:$0xff] %v3358_v54  ;;  %v3362_v2 = vadd.f32 %v3361_v46, %v5120_v23  ;;  %v3363_v35 = vpop.f32.mrb[51].mxu1 }
 0x5fb   : > { %3412 = vst [vmem:[%s5154_s22 + $0x18] sm:$0xff] %v3360_v10  ;;  %v3364_v29 = vadd.f32 %v3363_v35, %v5122_v56 }
 0x5fc   : > { %3417 = vst [vmem:[%s5154_s22 + $0x40] sm:$0xff] %v3362_v2 }
 0x5fd   : > { %3418 = vst [vmem:[%s5154_s22 + $0x48] sm:$0xff] %v3364_v29 }
 0x603   : > { %v3400_v37 = vpop.f32.mrb[52].mxu1 }
 0x604   : > { %v3401_v58 = vadd.f32 %v3400_v37, %v5124_v31  ;;  %v3402_v62 = vpop.f32.mrb[53].mxu1 }
 0x605   : > { %v3403_v15 = vadd.f32 %v3402_v62, %v5126_v33  ;;  %v3404_v51 = vpop.f32.mrb[54].mxu1 }
 0x606   : > { %3413 = vst [vmem:[%s5154_s22 + $0x20] sm:$0xff] %v3401_v58  ;;  %v3405_v53 = vadd.f32 %v3404_v51, %v5128_v25  ;;  %v3406_v49 = vpop.f32.mrb[55].mxu1 }
 0x607   : > { %3414 = vst [vmem:[%s5154_s22 + $0x28] sm:$0xff] %v3403_v15  ;;  %v3407_v21 = vadd.f32 %v3406_v49, %v5130_v55 }
 0x608   : > { %3419 = vst [vmem:[%s5154_s22 + $0x50] sm:$0xff] %v3405_v53 }
 0x609   : > { %3420 = vst [vmem:[%s5154_s22 + $0x58] sm:$0xff] %v3407_v21 }
 0x60a   : > { %3697 = shalt.err (!%p3694_p4)
}
 0x60b   : > { %s3698_s0 = scalar_lea.hbm %s5177_s2, 1536  ;;  %s3702_s8 = scalar_lea.hbm %s5234_s7, 3072 }
 0x60c   : > { %p3699_p7 = scmp.ne.s32.totalorder %s5177_s2, %s3698_s0  ;;  %p3703_p0 = scmp.lt.u32.totalorder %s5177_s2, %s5234_s7 }
 0x60d   : > { %p3704_p1 = scmp.lt.u32.totalorder %s3702_s8, %s3698_s0  ;;  %p3706_p6 = scmp.lt.u32.totalorder %s3698_s0, %s5177_s2 }
 0x60e   : > { %p3700_p8 = pnand %p3699_p7, %p5444_p11 }
 0x60f   : > { %p3705_p3 = por %p3704_p1, %p3703_p0 }
 0x610   : > { %p3701_p9 = pneg %p3700_p8 }
 0x611   : > { %p3707_p12 = por %p3706_p6, %p3705_p3 }
 0x613   : > { %p3708_p13 = pnand %p3707_p12, %p3701_p9 }
 0x615   : > { %3711 = shalt.err (!%p3708_p13)
}
 0x616   : > { %s3778_s17 = smov 768   ;;  %s3779_s11 = smov 48  }
 0x617   : > { %3577 = dma.vmem_to_hbm [thread:$0]  (%p5444_p11), %s5179_s18, 1536, %s5177_s2, %s3422_s28, %s3778_s17, %s3778_s17, %s3779_s11  }
 0x618 PF: > { %s5445_s3 = sld [smem:[#allocation13_spill]]  ;;  %s3450_s19 = sand.u32 1, %s3738_s24  }
 0x619   : > { %p5446_p5 = scmp.ne.s32.totalorder %s5330_s13, 0  ;;  %s3451_s20 = scalar_lea.sflag [#allocation7], %s3450_s19 }
 0x61e   : > { %p5447_p10 = scmp.ge.s32.totalorder %s5445_s3, 2 }
 0x620   : > { %p3584_p2 = pnand %p5447_p10, %p5446_p5 }
 0x622   : > { %3733 = dma.done.wait (!%p3584_p2), %s3451_s20, 1536  }
 0x623   : > { %3735 = vsyncadd (!%p3584_p2), %s3451_s20, 4294965760  ;;  %s5448_s27 = sld [smem:[#allocation14_spill]]  ;;  %s5449_s24 = sld [smem:[#allocation11_spill]] }
 0x624   : > { %s5450_s25 = sld [smem:[#allocation12_spill]]  ;;  %s5451_s26 = sld [smem:[#allocation15_spill]] }
 0x629   : > { %p20_p4 = scmp.ge.s32.totalorder %s5448_s27, 4  }
 0x62b   :  { %22 = sbr.rel (!%p20_p4) target bundleno = 9 (0x9), region = 93 }
 0x632   :  { %3456 = vsyncpa [#allocation6], 1 }
 0x633   :  { %3458 = vsyncpa [#allocation6 + $0x1], 1 }
 0x634   :  { %3459 = vsyncpa [#allocation7], 1 }
 0x635   :  { %3461 = vsyncpa [#allocation7 + $0x1], 1 }

</bundles_post_ra>
